<compile_context>
chip_gen: v6e
topology: v6e:2x2x1
jax: 0.10.0
libtpu: 0.0.40
codegen_flags: <defaults>
</compile_context>

<pallas_src>
import numpy as np
import jax
import jax.numpy as jnp
from jax.experimental import pallas as pl
from jax.experimental.pallas import tpu as pltpu


# ------------------------------- Pallas kernels ----------------------------- #

def _layers12_kernel(p1_ref, w1_ref, b1_ref, w2_ref, b2_ref, a2_ref):
    """conv1+bn1+pool2+relu and conv2+bn2+pool2+relu for one lane chunk.

    p1_ref : (36, 16*TB) bf16  rows = q*9 + (ki*3+kj), q = layer-1 pool offset;
                               lanes = (dh*4+dw)*TB + local, (dh,dw) = pooled pos mod 4,
                               local = chunk-local flat index over (n, h//4, w//4).
    w1_ref : (16, 36)   bf16   block-diagonal conv1 weight * bn1 scale, rows q*4+c.
    b1_ref : (4, 1)     f32    conv1 bias * bn1 scale + bn1 shift (added after pool max).
    w2_ref : (4, 8, 4)  bf16   conv2 weight * bn2 scale, [tap ki*2+kj, cout, cin].
    b2_ref : (8, 1)     f32    conv2 bias * bn2 scale + bn2 shift.
    a2_ref : (8, TB)    f32    layer-2 output for this chunk.
    """
    tb = a2_ref.shape[1]

    # ---- layer 1: one block-diagonal matmul over the 4 pool offsets ----
    y1 = jnp.dot(w1_ref[...], p1_ref[...], preferred_element_type=jnp.float32)  # (16, 16*tb)
    a1 = jnp.maximum(jnp.maximum(y1[0:4], y1[4:8]),
                     jnp.maximum(y1[8:12], y1[12:16]))            # pool over q -> (4, 16*tb)
    a1 = jnp.maximum(a1 + b1_ref[...], 0.0).astype(jnp.bfloat16)

    # ---- layer 2: per pool block accumulate 4 aligned tap matmuls, max over pool blocks ----
    a2 = None
    for pi in range(2):
        for pj in range(2):
            y2 = None
            for ki in range(2):
                for kj in range(2):
                    g = (2 * pi + ki) * 4 + (2 * pj + kj)
                    part = jnp.dot(w2_ref[ki * 2 + kj], a1[:, g * tb:(g + 1) * tb],
                                   preferred_element_type=jnp.float32)       # (8, tb)
                    y2 = part if y2 is None else y2 + part
            a2 = y2 if a2 is None else jnp.maximum(a2, y2)
    a2_ref[...] = jnp.maximum(a2 + b2_ref[...], 0.0)


def _layers34_kernel(a2t_ref, u_ref, b3_ref, w4_ref, b4_ref, o_ref):
    """fc1(2x2 conv)+bn3+relu and fc2(5x5 conv == dense), lane-dense in the batch dim.

    a2t_ref: (288, TN) f32  rows = cin*36 + r*6 + c, lanes = batch (zero padded).
    u_ref  : (400, 288) f32 fc1 unfolded to dense * bn3 scale, rows = co*25 + r*5 + c.
    b3_ref : (400, 1)  f32  fc1 bias * bn3 scale + bn3 shift, repeated over the 5x5 grid.
    w4_ref : (A, 400)  f32  fc2 weight.
    b4_ref : (A, 1)    f32  fc2 bias.
    o_ref  : (A, TN)   f32
    """
    h = jnp.dot(u_ref[...], a2t_ref[...], preferred_element_type=jnp.float32)  # (400, TN)
    h = jnp.maximum(h + b3_ref[...], 0.0)
    o_ref[...] = jnp.dot(w4_ref[...], h, preferred_element_type=jnp.float32) + b4_ref[...]


# ------------------------------- glue helpers ------------------------------- #

def _round_up(x, m):
    return (x + m - 1) // m * m


def _pick_lane_tile(n36):
    """Lane tile (multiple of 128).  Larger tiles on 128 MiB-VMEM chips (v5e/v6e),
    smaller on v7x (64 MiB)."""
    tb = 1024
    try:
        if pltpu.get_tpu_info().vmem_capacity_bytes >= 100 * 2**20:
            tb = 2048
    except Exception:
        pass
    return min(tb, _round_up(n36, 128))


def _build_patch_indices(n, tb, blk):
    """Static int32 gather indices producing p1 directly in kernel-A's chunked layout.

    Output shape (36, (blk//tb)*16*tb); axis0 = q*9 + (ki*3+kj); axis1 =
    chunk*16*tb + (dh*4+dw)*tb + local with chunk*tb+local == n*36 + R*6 + C for valid lanes.
    Source pixel for (q=(qi,qj), k=(ki,kj), dh, dw, R, C) is
    (16R + 4dh + 2qi + ki, 16C + 4dw + 2qj + kj) of image n.
    """
    g = blk // tb
    n36 = n * 36
    f = np.minimum(np.arange(blk, dtype=np.int32), n36 - 1)   # pad lanes clamp to a valid idx
    n_i = (f // 36).reshape(g, tb)
    rem = f % 36
    R = (rem // 6).reshape(g, tb)
    C = (rem % 6).reshape(g, tb)

    q = np.arange(4, dtype=np.int32); qi, qj = q // 2, q % 2
    k = np.arange(9, dtype=np.int32); ki, kj = k // 3, k % 3
    d = np.arange(4, dtype=np.int32)

    # broadcast axes: (q, k, chunk, dh, dw, local)
    row = (16 * R[None, None, :, None, None, :]
           + 4 * d[None, None, None, :, None, None]
           + 2 * qi[:, None, None, None, None, None]
           + ki[None, :, None, None, None, None])
    col = (16 * C[None, None, :, None, None, :]
           + 4 * d[None, None, None, None, :, None]
           + 2 * qj[:, None, None, None, None, None]
           + kj[None, :, None, None, None, None])
    src = n_i[None, None, :, None, None, :] * (97 * 97) + row * 97 + col
    return src.reshape(36, g * 16 * tb).astype(np.int32)


def _bn_fold(gamma, beta, mean, var, eps=1e-5):
    scale = gamma / jnp.sqrt(var + eps)
    return scale, beta - mean * scale


def _fold_params(params):
    s1, t1 = _bn_fold(*params["bn1"])
    w1s = s1[:, None] * params["conv1_w"][:, 0].reshape(4, 9)                 # (c, k)
    # block-diagonal over the 4 layer-1 pool offsets: rows q*4+c, cols q*9+k
    w1blk = (jnp.eye(4, dtype=jnp.float32)[:, None, :, None]
             * w1s[None, :, None, :]).reshape(16, 36).astype(jnp.bfloat16)
    b1f = (s1 * params["conv1_b"] + t1).reshape(4, 1)

    s2, t2 = _bn_fold(*params["bn2"])
    w2f = jnp.transpose(s2[:, None, None, None] * params["conv2_w"],
                        (2, 3, 0, 1)).reshape(4, 8, 4).astype(jnp.bfloat16)   # (tap, co, ci)
    b2f = (s2 * params["conv2_b"] + t2).reshape(8, 1)

    s3, t3 = _bn_fold(*params["bn3"])
    w3s = s3[:, None, None, None] * params["fc1_w"]                           # (16, 8, 2, 2)
    co3, ci3, k3i, k3j, r3, c3 = np.indices((16, 8, 2, 2, 5, 5))
    rows = (co3 * 25 + r3 * 5 + c3).reshape(-1)
    cols = (ci3 * 36 + (r3 + k3i) * 6 + (c3 + k3j)).reshape(-1)
    vals = jnp.broadcast_to(w3s[:, :, :, :, None, None], (16, 8, 2, 2, 5, 5)).reshape(-1)
    ut = jnp.zeros((400, 288), jnp.float32).at[rows, cols].set(vals)          # fc1 dense, transposed
    b3c = jnp.repeat(s3 * params["fc1_b"] + t3, 25).reshape(400, 1)

    num_actions = params["fc2_w"].shape[0]
    w4 = params["fc2_w"].reshape(num_actions, 400)
    b4c = params["fc2_b"].reshape(num_actions, 1)
    return w1blk, b1f, w2f, b2f, ut, b3c, w4, b4c


# ------------------------------- forward pass ------------------------------- #

def policy_network_cnn_forward(state_nchw, params, lane_tile=None):
    """state_nchw: (N, 1, 97, 97) float32.  97x97 is the spatial size the module's forward
    implies (97 -> conv1 48 -> pool 24 -> conv2 12 -> pool 6 -> fc1 5 -> fc2 1, so the final
    squeeze yields (N, num_actions))."""
    n, cin, hh, ww = state_nchw.shape
    assert cin == 1 and hh == 97 and ww == 97, "kernels are specialized to (N, 1, 97, 97)"

    n36 = n * 36
    tb = lane_tile if lane_tile is not None else _pick_lane_tile(n36)
    blk = _round_up(n36, tb)
    g = blk // tb

    # -------- one static-index gather: bf16 im2col slab already in kernel-A layout --------
    idx = jnp.asarray(_build_patch_indices(n, tb, blk))                       # (36, g*16*tb)
    x_flat = state_nchw.astype(jnp.bfloat16).reshape(-1)                      # (n*9409,)
    p1 = jnp.take(x_flat, idx)                                                # (36, g*16*tb)

    w1blk, b1f, w2f, b2f, ut, b3c, w4, b4c = _fold_params(params)
    num_actions = w4.shape[0]

    # ------------------------------- kernel A ------------------------------------------
    cost_a = pl.CostEstimate(
        flops=int(2 * 16 * 36 * 16 * blk + 16 * 2 * 8 * 4 * blk),
        transcendentals=0,
        bytes_accessed=int(36 * 16 * blk * 2 + 8 * blk * 4
                           + (16 * 36 + 4 * 8 * 4) * 2 + (4 + 8) * 4))
    vmem_a = int(min(48 * 2**20,
                     max(16 * 2**20, 4 * (36 * 16 * tb * 2 + 8 * tb * 4) + 2 * 2**20)))
    a2 = pl.pallas_call(
        _layers12_kernel,
        grid=(g,),
        in_specs=[
            pl.BlockSpec((36, 16 * tb), lambda i: (0, i)),   # p1 lane chunk (pipelined)
            pl.BlockSpec((16, 36), lambda i: (0, 0)),        # resident weights / biases
            pl.BlockSpec((4, 1), lambda i: (0, 0)),
            pl.BlockSpec((4, 8, 4), lambda i: (0, 0, 0)),
            pl.BlockSpec((8, 1), lambda i: (0, 0)),
        ],
        out_specs=pl.BlockSpec((8, tb), lambda i: (0, i)),
        out_shape=jax.ShapeDtypeStruct((8, blk), jnp.float32),
        compiler_params=pltpu.CompilerParams(
            dimension_semantics=("parallel",), vmem_limit_bytes=vmem_a),
        cost_estimate=cost_a,
    )(p1, w1blk, b1f, w2f, b2f)

    # (8, blk)[cin, n*36+pos] -> (288, Npad)[cin*36+pos, n]   (tiny rearrangement + pad)
    tn = 128
    n_pad = _round_up(n, tn)
    a2t = a2[:, :n36].reshape(8, n, 36).transpose(0, 2, 1).reshape(288, n)
    a2t = jnp.pad(a2t, ((0, 0), (0, n_pad - n)))

    # ------------------------------- kernel B ------------------------------------------
    cost_b = pl.CostEstimate(
        flops=int(2 * 400 * 288 * n_pad + 2 * num_actions * 400 * n_pad),
        transcendentals=0,
        bytes_accessed=int((288 * n_pad + 400 * 288 + 400 + num_actions * 400
                            + num_actions + num_actions * n_pad) * 4))
    o_t = pl.pallas_call(
        _layers34_kernel,
        grid=(n_pad // tn,),
        in_specs=[
            pl.BlockSpec((288, tn), lambda i: (0, i)),
            pl.BlockSpec((400, 288), lambda i: (0, 0)),
            pl.BlockSpec((400, 1), lambda i: (0, 0)),
            pl.BlockSpec((num_actions, 400), lambda i: (0, 0)),
            pl.BlockSpec((num_actions, 1), lambda i: (0, 0)),
        ],
        out_specs=pl.BlockSpec((num_actions, tn), lambda i: (0, i)),
        out_shape=jax.ShapeDtypeStruct((num_actions, n_pad), jnp.float32),
        compiler_params=pltpu.CompilerParams(
            dimension_semantics=("parallel",), vmem_limit_bytes=int(16 * 2**20)),
        cost_estimate=cost_b,
    )(a2t, ut, b3c, w4, b4c)

    return o_t[:, :n].T                                       # == x.squeeze(2).squeeze(2)


# --------------------------- deterministic params --------------------------- #

def init_params(key, num_actions):
    def conv_init(k, cout, cin, kh, kw):
        k1, k2 = jax.random.split(k)
        bound = 1.0 / np.sqrt(cin * kh * kw)
        w = jax.random.uniform(k1, (cout, cin, kh, kw), jnp.float32, -bound, bound)
        b = jax.random.uniform(k2, (cout,), jnp.float32, -bound, bound)
        return w, b

    def bn_init(k, c):
        k1, k2, k3, k4 = jax.random.split(k, 4)
        gamma = jax.random.uniform(k1, (c,), jnp.float32, 0.5, 1.5)
        beta = jax.random.uniform(k2, (c,), jnp.float32, -0.1, 0.1)
        mean = jax.random.uniform(k3, (c,), jnp.float32, -0.1, 0.1)
        var = jax.random.uniform(k4, (c,), jnp.float32, 0.5, 1.5)
        return gamma, beta, mean, var

    ks = jax.random.split(key, 7)
    p = {}
    p["conv1_w"], p["conv1_b"] = conv_init(ks[0], 4, 1, 3, 3)
    p["conv2_w"], p["conv2_b"] = conv_init(ks[1], 8, 4, 2, 2)
    p["fc1_w"], p["fc1_b"] = conv_init(ks[2], 16, 8, 2, 2)
    p["fc2_w"], p["fc2_b"] = conv_init(ks[3], num_actions, 16, 5, 5)
    p["bn1"] = bn_init(ks[4], 4)
    p["bn2"] = bn_init(ks[5], 8)
    p["bn3"] = bn_init(ks[6], 16)
    return p


# ------------------------- pure-JAX reference check ------------------------- #

def _reference_forward(state, params, eps=1e-5):
    def conv(x, w, b, stride):
        y = jax.lax.conv_general_dilated(
            x, w, (stride, stride), "VALID",
            dimension_numbers=("NCHW", "OIHW", "NCHW"),
            precision=jax.lax.Precision.HIGHEST)
        return y + b.reshape(1, -1, 1, 1)

    def bn(x, p):
        g, be, m, v = (a.reshape(1, -1, 1, 1) for a in p)
        return (x - m) / jnp.sqrt(v + eps) * g + be

    def pool(x):
        return jax.lax.reduce_window(x, -jnp.inf, jax.lax.max,
                                     (1, 1, 2, 2), (1, 1, 2, 2), "VALID")

    x = jax.nn.relu(pool(bn(conv(state, params["conv1_w"], params["conv1_b"], 2), params["bn1"])))
    x = jax.nn.relu(pool(bn(conv(x, params["conv2_w"], params["conv2_b"], 2), params["bn2"])))
    x = jax.nn.relu(bn(conv(x, params["fc1_w"], params["fc1_b"], 1), params["bn3"]))
    x = conv(x, params["fc2_w"], params["fc2_b"], 1)
    return x[:, :, 0, 0]


if __name__ == "__main__":
    num_actions = 3
    key = jax.random.PRNGKey(0)
    k_params, k_x = jax.random.split(key)
    params = init_params(k_params, num_actions)

    # 97x97 is the minimal input spatial size implied by the module's forward pass.
    state = jax.random.normal(k_x, (2, 1, 97, 97), jnp.float32)

    fwd = jax.jit(policy_network_cnn_forward)
    out = jax.block_until_ready(fwd(state, params))
    assert out.shape == (2, num_actions), out.shape

    ref = _reference_forward(state, params)
    # kernel A uses bf16 MXU operands (f32 accumulation) vs the f32 HIGHEST-precision
    # reference, so the tolerance is 2e-2 rather than the f32-only 1e-2.
    np.testing.assert_allclose(np.asarray(out), np.asarray(ref), rtol=2e-2, atol=2e-2)
    print("KERNEL_OK")
</pallas_src>

<mosaic_0001>
module attributes {stable_mosaic.version = 11 : i64} {
  func.func @_layers12_kernel(%arg0: i32, %arg1: memref<36x2048xbf16, #tpu.memory_space<vmem>>, %arg2: memref<16x36xbf16, #tpu.memory_space<vmem>>, %arg3: memref<4x1xf32, #tpu.memory_space<vmem>>, %arg4: memref<4x8x4xbf16, #tpu.memory_space<vmem>>, %arg5: memref<8x1xf32, #tpu.memory_space<vmem>>, %arg6: memref<8x128xf32, #tpu.memory_space<vmem>>) attributes {dimension_semantics = [#tpu.dimension_semantics<parallel>], iteration_bounds = array<i64: 1>, scalar_prefetch = 0 : i64, scratch_operands = 0 : i64, tpu.core_type = #tpu.core_type<tc>, window_params = [{transform_indices = @transform_0, window_bounds = array<i64: 36, 2048>}, {pipeline_mode = #tpu.pipeline_mode<synchronous>, transform_indices = @transform_1, window_bounds = array<i64: 16, 36>}, {pipeline_mode = #tpu.pipeline_mode<synchronous>, transform_indices = @transform_2, window_bounds = array<i64: 4, 1>}, {pipeline_mode = #tpu.pipeline_mode<synchronous>, transform_indices = @transform_3, window_bounds = array<i64: 4, 8, 4>}, {pipeline_mode = #tpu.pipeline_mode<synchronous>, transform_indices = @transform_4, window_bounds = array<i64: 8, 1>}, {transform_indices = @transform_5, window_bounds = array<i64: 8, 128>}]} {
    %c0 = arith.constant 0 : index
    %c0_0 = arith.constant 0 : index
    %0 = vector.load %arg2[%c0, %c0_0] : memref<16x36xbf16, #tpu.memory_space<vmem>>, vector<16x36xbf16>
    %c0_1 = arith.constant 0 : index
    %c0_2 = arith.constant 0 : index
    %1 = vector.load %arg1[%c0_1, %c0_2] : memref<36x2048xbf16, #tpu.memory_space<vmem>>, vector<36x2048xbf16>
    %cst = arith.constant dense<0.000000e+00> : vector<16x2048xf32>
    %2 = tpu.matmul %0, %1, %cst {dimension_numbers = #tpu.dot_dimension_numbers<[1], [0], [0], [1], [0, 0, 1, 1], [], []>} : vector<16x36xbf16>, vector<36x2048xbf16>, vector<16x2048xf32> -> vector<16x2048xf32>
    %3 = vector.extract_strided_slice %2 {offsets = [0, 0], sizes = [4, 2048], strides = [1, 1]} : vector<16x2048xf32> to vector<4x2048xf32>
    %4 = vector.extract_strided_slice %2 {offsets = [4, 0], sizes = [4, 2048], strides = [1, 1]} : vector<16x2048xf32> to vector<4x2048xf32>
    %5 = arith.maximumf %3, %4 : vector<4x2048xf32>
    %6 = vector.extract_strided_slice %2 {offsets = [8, 0], sizes = [4, 2048], strides = [1, 1]} : vector<16x2048xf32> to vector<4x2048xf32>
    %7 = vector.extract_strided_slice %2 {offsets = [12, 0], sizes = [4, 2048], strides = [1, 1]} : vector<16x2048xf32> to vector<4x2048xf32>
    %8 = arith.maximumf %6, %7 : vector<4x2048xf32>
    %9 = arith.maximumf %5, %8 : vector<4x2048xf32>
    %c0_3 = arith.constant 0 : index
    %c0_4 = arith.constant 0 : index
    %10 = vector.load %arg3[%c0_3, %c0_4] : memref<4x1xf32, #tpu.memory_space<vmem>>, vector<4x1xf32>
    %11 = vector.broadcast %10 : vector<4x1xf32> to vector<4x2048xf32>
    %12 = arith.addf %9, %11 : vector<4x2048xf32>
    %cst_5 = arith.constant 0.000000e+00 : f32
    %13 = vector.broadcast %cst_5 : f32 to vector<4x2048xf32>
    %14 = arith.maximumf %12, %13 : vector<4x2048xf32>
    %15 = arith.truncf %14 : vector<4x2048xf32> to vector<4x2048xbf16>
    %c0_6 = arith.constant 0 : index
    %c0_7 = arith.constant 0 : index
    %c0_8 = arith.constant 0 : index
    %16 = vector.load %arg4[%c0_6, %c0_7, %c0_8] : memref<4x8x4xbf16, #tpu.memory_space<vmem>>, vector<1x8x4xbf16>
    %17 = vector.shape_cast %16 : vector<1x8x4xbf16> to vector<8x4xbf16>
    %18 = vector.extract_strided_slice %15 {offsets = [0, 0], sizes = [4, 128], strides = [1, 1]} : vector<4x2048xbf16> to vector<4x128xbf16>
    %cst_9 = arith.constant dense<0.000000e+00> : vector<8x128xf32>
    %19 = tpu.matmul %17, %18, %cst_9 {dimension_numbers = #tpu.dot_dimension_numbers<[1], [0], [0], [1], [0, 0, 1, 1], [], []>} : vector<8x4xbf16>, vector<4x128xbf16>, vector<8x128xf32> -> vector<8x128xf32>
    %c1 = arith.constant 1 : index
    %c0_10 = arith.constant 0 : index
    %c0_11 = arith.constant 0 : index
    %20 = vector.load %arg4[%c1, %c0_10, %c0_11] : memref<4x8x4xbf16, #tpu.memory_space<vmem>>, vector<1x8x4xbf16>
    %21 = vector.shape_cast %20 : vector<1x8x4xbf16> to vector<8x4xbf16>
    %22 = vector.extract_strided_slice %15 {offsets = [0, 128], sizes = [4, 128], strides = [1, 1]} : vector<4x2048xbf16> to vector<4x128xbf16>
    %cst_12 = arith.constant dense<0.000000e+00> : vector<8x128xf32>
    %23 = tpu.matmul %21, %22, %cst_12 {dimension_numbers = #tpu.dot_dimension_numbers<[1], [0], [0], [1], [0, 0, 1, 1], [], []>} : vector<8x4xbf16>, vector<4x128xbf16>, vector<8x128xf32> -> vector<8x128xf32>
    %24 = arith.addf %19, %23 : vector<8x128xf32>
    %c2 = arith.constant 2 : index
    %c0_13 = arith.constant 0 : index
    %c0_14 = arith.constant 0 : index
    %25 = vector.load %arg4[%c2, %c0_13, %c0_14] : memref<4x8x4xbf16, #tpu.memory_space<vmem>>, vector<1x8x4xbf16>
    %26 = vector.shape_cast %25 : vector<1x8x4xbf16> to vector<8x4xbf16>
    %27 = vector.extract_strided_slice %15 {offsets = [0, 512], sizes = [4, 128], strides = [1, 1]} : vector<4x2048xbf16> to vector<4x128xbf16>
    %cst_15 = arith.constant dense<0.000000e+00> : vector<8x128xf32>
    %28 = tpu.matmul %26, %27, %cst_15 {dimension_numbers = #tpu.dot_dimension_numbers<[1], [0], [0], [1], [0, 0, 1, 1], [], []>} : vector<8x4xbf16>, vector<4x128xbf16>, vector<8x128xf32> -> vector<8x128xf32>
    %29 = arith.addf %24, %28 : vector<8x128xf32>
    %c3 = arith.constant 3 : index
    %c0_16 = arith.constant 0 : index
    %c0_17 = arith.constant 0 : index
    %30 = vector.load %arg4[%c3, %c0_16, %c0_17] : memref<4x8x4xbf16, #tpu.memory_space<vmem>>, vector<1x8x4xbf16>
    %31 = vector.shape_cast %30 : vector<1x8x4xbf16> to vector<8x4xbf16>
    %32 = vector.extract_strided_slice %15 {offsets = [0, 640], sizes = [4, 128], strides = [1, 1]} : vector<4x2048xbf16> to vector<4x128xbf16>
    %cst_18 = arith.constant dense<0.000000e+00> : vector<8x128xf32>
    %33 = tpu.matmul %31, %32, %cst_18 {dimension_numbers = #tpu.dot_dimension_numbers<[1], [0], [0], [1], [0, 0, 1, 1], [], []>} : vector<8x4xbf16>, vector<4x128xbf16>, vector<8x128xf32> -> vector<8x128xf32>
    %34 = arith.addf %29, %33 : vector<8x128xf32>
    %c0_19 = arith.constant 0 : index
    %c0_20 = arith.constant 0 : index
    %c0_21 = arith.constant 0 : index
    %35 = vector.load %arg4[%c0_19, %c0_20, %c0_21] : memref<4x8x4xbf16, #tpu.memory_space<vmem>>, vector<1x8x4xbf16>
    %36 = vector.shape_cast %35 : vector<1x8x4xbf16> to vector<8x4xbf16>
    %37 = vector.extract_strided_slice %15 {offsets = [0, 256], sizes = [4, 128], strides = [1, 1]} : vector<4x2048xbf16> to vector<4x128xbf16>
    %cst_22 = arith.constant dense<0.000000e+00> : vector<8x128xf32>
    %38 = tpu.matmul %36, %37, %cst_22 {dimension_numbers = #tpu.dot_dimension_numbers<[1], [0], [0], [1], [0, 0, 1, 1], [], []>} : vector<8x4xbf16>, vector<4x128xbf16>, vector<8x128xf32> -> vector<8x128xf32>
    %c1_23 = arith.constant 1 : index
    %c0_24 = arith.constant 0 : index
    %c0_25 = arith.constant 0 : index
    %39 = vector.load %arg4[%c1_23, %c0_24, %c0_25] : memref<4x8x4xbf16, #tpu.memory_space<vmem>>, vector<1x8x4xbf16>
    %40 = vector.shape_cast %39 : vector<1x8x4xbf16> to vector<8x4xbf16>
    %41 = vector.extract_strided_slice %15 {offsets = [0, 384], sizes = [4, 128], strides = [1, 1]} : vector<4x2048xbf16> to vector<4x128xbf16>
    %cst_26 = arith.constant dense<0.000000e+00> : vector<8x128xf32>
    %42 = tpu.matmul %40, %41, %cst_26 {dimension_numbers = #tpu.dot_dimension_numbers<[1], [0], [0], [1], [0, 0, 1, 1], [], []>} : vector<8x4xbf16>, vector<4x128xbf16>, vector<8x128xf32> -> vector<8x128xf32>
    %43 = arith.addf %38, %42 : vector<8x128xf32>
    %c2_27 = arith.constant 2 : index
    %c0_28 = arith.constant 0 : index
    %c0_29 = arith.constant 0 : index
    %44 = vector.load %arg4[%c2_27, %c0_28, %c0_29] : memref<4x8x4xbf16, #tpu.memory_space<vmem>>, vector<1x8x4xbf16>
    %45 = vector.shape_cast %44 : vector<1x8x4xbf16> to vector<8x4xbf16>
    %46 = vector.extract_strided_slice %15 {offsets = [0, 768], sizes = [4, 128], strides = [1, 1]} : vector<4x2048xbf16> to vector<4x128xbf16>
    %cst_30 = arith.constant dense<0.000000e+00> : vector<8x128xf32>
    %47 = tpu.matmul %45, %46, %cst_30 {dimension_numbers = #tpu.dot_dimension_numbers<[1], [0], [0], [1], [0, 0, 1, 1], [], []>} : vector<8x4xbf16>, vector<4x128xbf16>, vector<8x128xf32> -> vector<8x128xf32>
    %48 = arith.addf %43, %47 : vector<8x128xf32>
    %c3_31 = arith.constant 3 : index
    %c0_32 = arith.constant 0 : index
    %c0_33 = arith.constant 0 : index
    %49 = vector.load %arg4[%c3_31, %c0_32, %c0_33] : memref<4x8x4xbf16, #tpu.memory_space<vmem>>, vector<1x8x4xbf16>
    %50 = vector.shape_cast %49 : vector<1x8x4xbf16> to vector<8x4xbf16>
    %51 = vector.extract_strided_slice %15 {offsets = [0, 896], sizes = [4, 128], strides = [1, 1]} : vector<4x2048xbf16> to vector<4x128xbf16>
    %cst_34 = arith.constant dense<0.000000e+00> : vector<8x128xf32>
    %52 = tpu.matmul %50, %51, %cst_34 {dimension_numbers = #tpu.dot_dimension_numbers<[1], [0], [0], [1], [0, 0, 1, 1], [], []>} : vector<8x4xbf16>, vector<4x128xbf16>, vector<8x128xf32> -> vector<8x128xf32>
    %53 = arith.addf %48, %52 : vector<8x128xf32>
    %54 = arith.maximumf %34, %53 : vector<8x128xf32>
    %c0_35 = arith.constant 0 : index
    %c0_36 = arith.constant 0 : index
    %c0_37 = arith.constant 0 : index
    %55 = vector.load %arg4[%c0_35, %c0_36, %c0_37] : memref<4x8x4xbf16, #tpu.memory_space<vmem>>, vector<1x8x4xbf16>
    %56 = vector.shape_cast %55 : vector<1x8x4xbf16> to vector<8x4xbf16>
    %57 = vector.extract_strided_slice %15 {offsets = [0, 1024], sizes = [4, 128], strides = [1, 1]} : vector<4x2048xbf16> to vector<4x128xbf16>
    %cst_38 = arith.constant dense<0.000000e+00> : vector<8x128xf32>
    %58 = tpu.matmul %56, %57, %cst_38 {dimension_numbers = #tpu.dot_dimension_numbers<[1], [0], [0], [1], [0, 0, 1, 1], [], []>} : vector<8x4xbf16>, vector<4x128xbf16>, vector<8x128xf32> -> vector<8x128xf32>
    %c1_39 = arith.constant 1 : index
    %c0_40 = arith.constant 0 : index
    %c0_41 = arith.constant 0 : index
    %59 = vector.load %arg4[%c1_39, %c0_40, %c0_41] : memref<4x8x4xbf16, #tpu.memory_space<vmem>>, vector<1x8x4xbf16>
    %60 = vector.shape_cast %59 : vector<1x8x4xbf16> to vector<8x4xbf16>
    %61 = vector.extract_strided_slice %15 {offsets = [0, 1152], sizes = [4, 128], strides = [1, 1]} : vector<4x2048xbf16> to vector<4x128xbf16>
    %cst_42 = arith.constant dense<0.000000e+00> : vector<8x128xf32>
    %62 = tpu.matmul %60, %61, %cst_42 {dimension_numbers = #tpu.dot_dimension_numbers<[1], [0], [0], [1], [0, 0, 1, 1], [], []>} : vector<8x4xbf16>, vector<4x128xbf16>, vector<8x128xf32> -> vector<8x128xf32>
    %63 = arith.addf %58, %62 : vector<8x128xf32>
    %c2_43 = arith.constant 2 : index
    %c0_44 = arith.constant 0 : index
    %c0_45 = arith.constant 0 : index
    %64 = vector.load %arg4[%c2_43, %c0_44, %c0_45] : memref<4x8x4xbf16, #tpu.memory_space<vmem>>, vector<1x8x4xbf16>
    %65 = vector.shape_cast %64 : vector<1x8x4xbf16> to vector<8x4xbf16>
    %66 = vector.extract_strided_slice %15 {offsets = [0, 1536], sizes = [4, 128], strides = [1, 1]} : vector<4x2048xbf16> to vector<4x128xbf16>
    %cst_46 = arith.constant dense<0.000000e+00> : vector<8x128xf32>
    %67 = tpu.matmul %65, %66, %cst_46 {dimension_numbers = #tpu.dot_dimension_numbers<[1], [0], [0], [1], [0, 0, 1, 1], [], []>} : vector<8x4xbf16>, vector<4x128xbf16>, vector<8x128xf32> -> vector<8x128xf32>
    %68 = arith.addf %63, %67 : vector<8x128xf32>
    %c3_47 = arith.constant 3 : index
    %c0_48 = arith.constant 0 : index
    %c0_49 = arith.constant 0 : index
    %69 = vector.load %arg4[%c3_47, %c0_48, %c0_49] : memref<4x8x4xbf16, #tpu.memory_space<vmem>>, vector<1x8x4xbf16>
    %70 = vector.shape_cast %69 : vector<1x8x4xbf16> to vector<8x4xbf16>
    %71 = vector.extract_strided_slice %15 {offsets = [0, 1664], sizes = [4, 128], strides = [1, 1]} : vector<4x2048xbf16> to vector<4x128xbf16>
    %cst_50 = arith.constant dense<0.000000e+00> : vector<8x128xf32>
    %72 = tpu.matmul %70, %71, %cst_50 {dimension_numbers = #tpu.dot_dimension_numbers<[1], [0], [0], [1], [0, 0, 1, 1], [], []>} : vector<8x4xbf16>, vector<4x128xbf16>, vector<8x128xf32> -> vector<8x128xf32>
    %73 = arith.addf %68, %72 : vector<8x128xf32>
    %74 = arith.maximumf %54, %73 : vector<8x128xf32>
    %c0_51 = arith.constant 0 : index
    %c0_52 = arith.constant 0 : index
    %c0_53 = arith.constant 0 : index
    %75 = vector.load %arg4[%c0_51, %c0_52, %c0_53] : memref<4x8x4xbf16, #tpu.memory_space<vmem>>, vector<1x8x4xbf16>
    %76 = vector.shape_cast %75 : vector<1x8x4xbf16> to vector<8x4xbf16>
    %77 = vector.extract_strided_slice %15 {offsets = [0, 1280], sizes = [4, 128], strides = [1, 1]} : vector<4x2048xbf16> to vector<4x128xbf16>
    %cst_54 = arith.constant dense<0.000000e+00> : vector<8x128xf32>
    %78 = tpu.matmul %76, %77, %cst_54 {dimension_numbers = #tpu.dot_dimension_numbers<[1], [0], [0], [1], [0, 0, 1, 1], [], []>} : vector<8x4xbf16>, vector<4x128xbf16>, vector<8x128xf32> -> vector<8x128xf32>
    %c1_55 = arith.constant 1 : index
    %c0_56 = arith.constant 0 : index
    %c0_57 = arith.constant 0 : index
    %79 = vector.load %arg4[%c1_55, %c0_56, %c0_57] : memref<4x8x4xbf16, #tpu.memory_space<vmem>>, vector<1x8x4xbf16>
    %80 = vector.shape_cast %79 : vector<1x8x4xbf16> to vector<8x4xbf16>
    %81 = vector.extract_strided_slice %15 {offsets = [0, 1408], sizes = [4, 128], strides = [1, 1]} : vector<4x2048xbf16> to vector<4x128xbf16>
    %cst_58 = arith.constant dense<0.000000e+00> : vector<8x128xf32>
    %82 = tpu.matmul %80, %81, %cst_58 {dimension_numbers = #tpu.dot_dimension_numbers<[1], [0], [0], [1], [0, 0, 1, 1], [], []>} : vector<8x4xbf16>, vector<4x128xbf16>, vector<8x128xf32> -> vector<8x128xf32>
    %83 = arith.addf %78, %82 : vector<8x128xf32>
    %c2_59 = arith.constant 2 : index
    %c0_60 = arith.constant 0 : index
    %c0_61 = arith.constant 0 : index
    %84 = vector.load %arg4[%c2_59, %c0_60, %c0_61] : memref<4x8x4xbf16, #tpu.memory_space<vmem>>, vector<1x8x4xbf16>
    %85 = vector.shape_cast %84 : vector<1x8x4xbf16> to vector<8x4xbf16>
    %86 = vector.extract_strided_slice %15 {offsets = [0, 1792], sizes = [4, 128], strides = [1, 1]} : vector<4x2048xbf16> to vector<4x128xbf16>
    %cst_62 = arith.constant dense<0.000000e+00> : vector<8x128xf32>
    %87 = tpu.matmul %85, %86, %cst_62 {dimension_numbers = #tpu.dot_dimension_numbers<[1], [0], [0], [1], [0, 0, 1, 1], [], []>} : vector<8x4xbf16>, vector<4x128xbf16>, vector<8x128xf32> -> vector<8x128xf32>
    %88 = arith.addf %83, %87 : vector<8x128xf32>
    %c3_63 = arith.constant 3 : index
    %c0_64 = arith.constant 0 : index
    %c0_65 = arith.constant 0 : index
    %89 = vector.load %arg4[%c3_63, %c0_64, %c0_65] : memref<4x8x4xbf16, #tpu.memory_space<vmem>>, vector<1x8x4xbf16>
    %90 = vector.shape_cast %89 : vector<1x8x4xbf16> to vector<8x4xbf16>
    %91 = vector.extract_strided_slice %15 {offsets = [0, 1920], sizes = [4, 128], strides = [1, 1]} : vector<4x2048xbf16> to vector<4x128xbf16>
    %cst_66 = arith.constant dense<0.000000e+00> : vector<8x128xf32>
    %92 = tpu.matmul %90, %91, %cst_66 {dimension_numbers = #tpu.dot_dimension_numbers<[1], [0], [0], [1], [0, 0, 1, 1], [], []>} : vector<8x4xbf16>, vector<4x128xbf16>, vector<8x128xf32> -> vector<8x128xf32>
    %93 = arith.addf %88, %92 : vector<8x128xf32>
    %94 = arith.maximumf %74, %93 : vector<8x128xf32>
    %c0_67 = arith.constant 0 : index
    %c0_68 = arith.constant 0 : index
    %95 = vector.load %arg5[%c0_67, %c0_68] : memref<8x1xf32, #tpu.memory_space<vmem>>, vector<8x1xf32>
    %96 = vector.broadcast %95 : vector<8x1xf32> to vector<8x128xf32>
    %97 = arith.addf %94, %96 : vector<8x128xf32>
    %cst_69 = arith.constant 0.000000e+00 : f32
    %98 = vector.broadcast %cst_69 : f32 to vector<8x128xf32>
    %99 = arith.maximumf %97, %98 : vector<8x128xf32>
    %c0_70 = arith.constant 0 : index
    %c0_71 = arith.constant 0 : index
    %100 = vector.load %arg6[%c0_70, %c0_71] : memref<8x128xf32, #tpu.memory_space<vmem>>, vector<8x128xf32>
    tpu.vector_store %arg6[%c0_70, %c0_71], %99 {strides = array<i32>} : memref<8x128xf32, #tpu.memory_space<vmem>>, vector<8x128xf32>,
    return
  }
  func.func @transform_0(%arg0: i32) -> (i32, i32) {
    %c0_i32 = arith.constant 0 : i32
    %c0_i32_0 = arith.constant 0 : i32
    return %c0_i32, %arg0 : i32, i32
  }
  func.func @transform_1(%arg0: i32) -> (i32, i32) {
    %c0_i32 = arith.constant 0 : i32
    %c0_i32_0 = arith.constant 0 : i32
    %c0_i32_1 = arith.constant 0 : i32
    return %c0_i32, %c0_i32_0 : i32, i32
  }
  func.func @transform_2(%arg0: i32) -> (i32, i32) {
    %c0_i32 = arith.constant 0 : i32
    %c0_i32_0 = arith.constant 0 : i32
    %c0_i32_1 = arith.constant 0 : i32
    return %c0_i32, %c0_i32_0 : i32, i32
  }
  func.func @transform_3(%arg0: i32) -> (i32, i32, i32) {
    %c0_i32 = arith.constant 0 : i32
    %c0_i32_0 = arith.constant 0 : i32
    %c0_i32_1 = arith.constant 0 : i32
    %c0_i32_2 = arith.constant 0 : i32
    return %c0_i32, %c0_i32_0, %c0_i32_1 : i32, i32, i32
  }
  func.func @transform_4(%arg0: i32) -> (i32, i32) {
    %c0_i32 = arith.constant 0 : i32
    %c0_i32_0 = arith.constant 0 : i32
    %c0_i32_1 = arith.constant 0 : i32
    return %c0_i32, %c0_i32_0 : i32, i32
  }
  func.func @transform_5(%arg0: i32) -> (i32, i32) {
    %c0_i32 = arith.constant 0 : i32
    %c0_i32_0 = arith.constant 0 : i32
    return %c0_i32, %arg0 : i32, i32
  }
}

module attributes {stable_mosaic.version = 11 : i64} {
  func.func @_layers34_kernel(%arg0: i32, %arg1: memref<288x128xf32, #tpu.memory_space<vmem>>, %arg2: memref<400x288xf32, #tpu.memory_space<vmem>>, %arg3: memref<400x1xf32, #tpu.memory_space<vmem>>, %arg4: memref<3x400xf32, #tpu.memory_space<vmem>>, %arg5: memref<3x1xf32, #tpu.memory_space<vmem>>, %arg6: memref<3x128xf32, #tpu.memory_space<vmem>>) attributes {dimension_semantics = [#tpu.dimension_semantics<parallel>], iteration_bounds = array<i64: 1>, scalar_prefetch = 0 : i64, scratch_operands = 0 : i64, tpu.core_type = #tpu.core_type<tc>, window_params = [{transform_indices = @transform_0, window_bounds = array<i64: 288, 128>}, {pipeline_mode = #tpu.pipeline_mode<synchronous>, transform_indices = @transform_1, window_bounds = array<i64: 400, 288>}, {pipeline_mode = #tpu.pipeline_mode<synchronous>, transform_indices = @transform_2, window_bounds = array<i64: 400, 1>}, {pipeline_mode = #tpu.pipeline_mode<synchronous>, transform_indices = @transform_3, window_bounds = array<i64: 3, 400>}, {pipeline_mode = #tpu.pipeline_mode<synchronous>, transform_indices = @transform_4, window_bounds = array<i64: 3, 1>}, {transform_indices = @transform_5, window_bounds = array<i64: 3, 128>}]} {
    %c0 = arith.constant 0 : index
    %c0_0 = arith.constant 0 : index
    %0 = vector.load %arg2[%c0, %c0_0] : memref<400x288xf32, #tpu.memory_space<vmem>>, vector<400x288xf32>
    %c0_1 = arith.constant 0 : index
    %c0_2 = arith.constant 0 : index
    %1 = vector.load %arg1[%c0_1, %c0_2] : memref<288x128xf32, #tpu.memory_space<vmem>>, vector<288x128xf32>
    %cst = arith.constant dense<0.000000e+00> : vector<400x128xf32>
    %2 = tpu.matmul %0, %1, %cst {dimension_numbers = #tpu.dot_dimension_numbers<[1], [0], [0], [1], [0, 0, 1, 1], [], []>} : vector<400x288xf32>, vector<288x128xf32>, vector<400x128xf32> -> vector<400x128xf32>
    %c0_3 = arith.constant 0 : index
    %c0_4 = arith.constant 0 : index
    %3 = vector.load %arg3[%c0_3, %c0_4] : memref<400x1xf32, #tpu.memory_space<vmem>>, vector<400x1xf32>
    %4 = vector.broadcast %3 : vector<400x1xf32> to vector<400x128xf32>
    %5 = arith.addf %2, %4 : vector<400x128xf32>
    %cst_5 = arith.constant 0.000000e+00 : f32
    %6 = vector.broadcast %cst_5 : f32 to vector<400x128xf32>
    %7 = arith.maximumf %5, %6 : vector<400x128xf32>
    %c0_6 = arith.constant 0 : index
    %c0_7 = arith.constant 0 : index
    %8 = vector.load %arg4[%c0_6, %c0_7] : memref<3x400xf32, #tpu.memory_space<vmem>>, vector<3x400xf32>
    %cst_8 = arith.constant dense<0.000000e+00> : vector<3x128xf32>
    %9 = tpu.matmul %8, %7, %cst_8 {dimension_numbers = #tpu.dot_dimension_numbers<[1], [0], [0], [1], [0, 0, 1, 1], [], []>} : vector<3x400xf32>, vector<400x128xf32>, vector<3x128xf32> -> vector<3x128xf32>
    %c0_9 = arith.constant 0 : index
    %c0_10 = arith.constant 0 : index
    %10 = vector.load %arg5[%c0_9, %c0_10] : memref<3x1xf32, #tpu.memory_space<vmem>>, vector<3x1xf32>
    %11 = vector.broadcast %10 : vector<3x1xf32> to vector<3x128xf32>
    %12 = arith.addf %9, %11 : vector<3x128xf32>
    %c0_11 = arith.constant 0 : index
    %c0_12 = arith.constant 0 : index
    %13 = vector.load %arg6[%c0_11, %c0_12] : memref<3x128xf32, #tpu.memory_space<vmem>>, vector<3x128xf32>
    tpu.vector_store %arg6[%c0_11, %c0_12], %12 {strides = array<i32>} : memref<3x128xf32, #tpu.memory_space<vmem>>, vector<3x128xf32>,
    return
  }
  func.func @transform_0(%arg0: i32) -> (i32, i32) {
    %c0_i32 = arith.constant 0 : i32
    %c0_i32_0 = arith.constant 0 : i32
    return %c0_i32, %arg0 : i32, i32
  }
  func.func @transform_1(%arg0: i32) -> (i32, i32) {
    %c0_i32 = arith.constant 0 : i32
    %c0_i32_0 = arith.constant 0 : i32
    %c0_i32_1 = arith.constant 0 : i32
    return %c0_i32, %c0_i32_0 : i32, i32
  }
  func.func @transform_2(%arg0: i32) -> (i32, i32) {
    %c0_i32 = arith.constant 0 : i32
    %c0_i32_0 = arith.constant 0 : i32
    %c0_i32_1 = arith.constant 0 : i32
    return %c0_i32, %c0_i32_0 : i32, i32
  }
  func.func @transform_3(%arg0: i32) -> (i32, i32) {
    %c0_i32 = arith.constant 0 : i32
    %c0_i32_0 = arith.constant 0 : i32
    %c0_i32_1 = arith.constant 0 : i32
    return %c0_i32, %c0_i32_0 : i32, i32
  }
  func.func @transform_4(%arg0: i32) -> (i32, i32) {
    %c0_i32 = arith.constant 0 : i32
    %c0_i32_0 = arith.constant 0 : i32
    %c0_i32_1 = arith.constant 0 : i32
    return %c0_i32, %c0_i32_0 : i32, i32
  }
  func.func @transform_5(%arg0: i32) -> (i32, i32) {
    %c0_i32 = arith.constant 0 : i32
    %c0_i32_0 = arith.constant 0 : i32
    return %c0_i32, %arg0 : i32, i32
  }
}

</mosaic_0001>

<bundles_post_ra>
// kernel: policy_network_cnn_forward.2
= control target key start
LH: loop header
LB: loop body
LE: loop exit
PB: predicated region body
PF: predicated region fallthrough
CT: control target
= control target key end

     0   :  { %vm272_vm0 = vcmask 1041408   ;;  %v1828_v3 = vmov 0   ;;  %vm268_vm1 = vcmask 293888   ;;  %vm1830_vm2 = vmmov 0   ;;  %s2186_s0 = inlined_call_operand.vmem [shape: bf16[36,2048], index: 0, kind: input, shape index: {}]   ;;  %s2187_s1 = inlined_call_operand.vmem [shape: bf16[16,36], index: 1, kind: input, shape index: {}]   ;;  %s2188_s2 = inlined_call_operand.vmem [shape: f32[4,1], index: 2, kind: input, shape index: {}]   ;;  %s2189_s4 = inlined_call_operand.vmem [shape: f32[8,1], index: 4, kind: input, shape index: {}]   ;;  %s2190_s3 = inlined_call_operand.vmem [shape: bf16[4,8,4], index: 3, kind: input, shape index: {}]   ;;  %s2191_s5 = inlined_call_operand.vmem [shape: f32[8,128], index: 5, kind: output, shape index: {}]  }
   0x1   :  { %v55_v0 = vld [vmem:[%s2186_s0 + $0x100] sm:$0x33]  ;;  %v56_v1 = vld [vmem:[%s2186_s0 + $0x108] sm:$0x33]  ;;  %353 = vmatprep.mubr.bf16.mxu0 %v1828_v3  ;;  %396 = vmatprep.mubr.bf16.mxu1 %v1828_v3  ;;  %v57_v23 = vld [vmem:[%s2186_s0 + $0x110] sm:$0x33] }
   0x2   :  { %v39_v2 = vld [vmem:[%s2186_s0 + $0x80] sm:$0xff]  ;;  %v1629_v4 = vcombine.high %v55_v0, %v55_v0  ;;  %v1631_v5 = vcombine.high %v56_v1, %v56_v1  ;;  %v1628_v6 = vcombine.low %v55_v0, %v55_v0  ;;  %v1630_v7 = vcombine.low %v56_v1, %v56_v1  ;;  %v40_v9 = vld [vmem:[%s2186_s0 + $0x88] sm:$0xff]  ;;  %1810 = vset.pattern.permute.xlu0 %v1828_v3  ;;  %v58_v24 = vld [vmem:[%s2186_s0 + $0x118] sm:$0x33] }
   0x3   :  { %v47_v8 = vld [vmem:[%s2186_s0 + $0xc0] sm:$0xff]  ;;  %v48_v10 = vld [vmem:[%s2186_s0 + $0xc8] sm:$0xff]  ;;  %v1633_v27 = vcombine.high %v57_v23, %v57_v23  ;;  %v1635_v28 = vcombine.high %v58_v24, %v58_v24  ;;  %v1632_v29 = vcombine.low %v57_v23, %v57_v23  ;;  %v1634_v30 = vcombine.low %v58_v24, %v58_v24  ;;  %v41_v31 = vld [vmem:[%s2186_s0 + $0x90] sm:$0xff] }
   0x4   :  { %v1613_v11 = vcombine.high %v39_v2, %v47_v8  ;;  %v1615_v12 = vcombine.high %v40_v9, %v48_v10  ;;  %v23_v13 = vld [vmem:[%s2186_s0] sm:$0xff]  ;;  %v24_v15 = vld [vmem:[%s2186_s0 + $0x8] sm:$0xff]  ;;  %1644 = vmatprep.subr.msk.bf16.mxu0 %vm272_vm0, %v1629_v4  ;;  %1646 = vmatprep.subr.msk.bf16.mxu1 %vm272_vm0, %v1631_v5  ;;  %v274_v16 = vsel %vm272_vm0, %v1628_v6, 0  ;;  %v280_v17 = vsel %vm272_vm0, %v1630_v7, 0  ;;  %v49_v32 = vld [vmem:[%s2186_s0 + $0xd0] sm:$0xff] }
   0x5   :  { %v31_v14 = vld [vmem:[%s2186_s0 + $0x40] sm:$0xff]  ;;  %v32_v18 = vld [vmem:[%s2186_s0 + $0x48] sm:$0xff]  ;;  %332 = vmatpush1.bf16.msra.mxu0 %v274_v16  ;;  %375 = vmatpush1.bf16.msra.mxu1 %v280_v17  ;;  %v1612_v19 = vcombine.low %v39_v2, %v47_v8  ;;  %v1614_v20 = vcombine.low %v40_v9, %v48_v10  ;;  %v42_v33 = vld [vmem:[%s2186_s0 + $0x98] sm:$0xff]  ;;  %v286_v36 = vsel %vm272_vm0, %v1632_v29, 0  ;;  %v292_v37 = vsel %vm272_vm0, %v1634_v30, 0 }
   0x6   :  { %333 = vmatprep.subr.bf16.mxu0 %v1613_v11  ;;  %376 = vmatprep.subr.bf16.mxu1 %v1615_v12  ;;  %v1597_v21 = vcombine.high %v23_v13, %v31_v14  ;;  %v1599_v22 = vcombine.high %v24_v15, %v32_v18  ;;  %v1596_v25 = vcombine.low %v23_v13, %v31_v14  ;;  %v50_v34 = vld [vmem:[%s2186_s0 + $0xd8] sm:$0xff]  ;;  %v1919_v35 = vld [vmem:[%s2187_s1] sm:$0xff]   ;;  %v25_v40 = vld [vmem:[%s2186_s0 + $0x10] sm:$0xff]  ;;  %vm866_vm3 = vcmask 31744  }
   0x7   :  { %v1598_v26 = vcombine.low %v24_v15, %v32_v18  ;;  %v1617_v38 = vcombine.high %v41_v31, %v49_v32  ;;  %v1619_v39 = vcombine.high %v42_v33, %v50_v34  ;;  %v33_v41 = vld [vmem:[%s2186_s0 + $0x50] sm:$0xff]  ;;  %v26_v42 = vld [vmem:[%s2186_s0 + $0x18] sm:$0xff]  ;;  %v1616_v44 = vcombine.low %v41_v31, %v49_v32  ;;  %v809_v46 = vld [vmem:[%s2188_s2] sm:$0xf] }
   0x8   :  { %v34_v43 = vld [vmem:[%s2186_s0 + $0x58] sm:$0xff]  ;;  %v1618_v45 = vcombine.low %v42_v33, %v50_v34  ;;  %v1601_v47 = vcombine.high %v25_v40, %v33_v41  ;;  %v59_v49 = vld [vmem:[%s2186_s0 + $0x120] sm:$0x33]  ;;  %v60_v50 = vld [vmem:[%s2186_s0 + $0x128] sm:$0x33]  ;;  %812 = vperm.xlu0 %1810, %v809_v46   ;;  %v1600_v51 = vcombine.low %v25_v40, %v33_v41 }
   0x9   :  { %334 = vmatpush1.bf16.msra.mxu0 %v1612_v19  ;;  %377 = vmatpush1.bf16.msra.mxu1 %v1614_v20  ;;  %v1603_v48 = vcombine.high %v26_v42, %v34_v43  ;;  %v1602_v52 = vcombine.low %v26_v42, %v34_v43  ;;  %v1637_v53 = vcombine.high %v59_v49, %v59_v49  ;;  %v1582_v54 = vld [vmem:[%s2189_s4] sm:$0xff]  ;;  %v44_v60 = vld [vmem:[%s2186_s0 + $0xa8] sm:$0xff]  ;;  %v61_v11 = vld [vmem:[%s2186_s0 + $0x130] sm:$0x33] }
   0xa   :  { %335 = vmatprep.subr.bf16.mxu0 %v1597_v21  ;;  %378 = vmatprep.subr.bf16.mxu1 %v1599_v22  ;;  %v1639_v55 = vcombine.high %v60_v50, %v60_v50  ;;  %v1636_v56 = vcombine.low %v59_v49, %v59_v49  ;;  %v1638_v57 = vcombine.low %v60_v50, %v60_v50  ;;  %v43_v58 = vld [vmem:[%s2186_s0 + $0xa0] sm:$0xff]  ;;  %v52_v61 = vld [vmem:[%s2186_s0 + $0xe8] sm:$0xff]  ;;  %v62_v12 = vld [vmem:[%s2186_s0 + $0x138] sm:$0x33] }
   0xb   :  { %v51_v59 = vld [vmem:[%s2186_s0 + $0xe0] sm:$0xff]  ;;  %v1623_v1 = vcombine.high %v44_v60, %v52_v61  ;;  %v28_v5 = vld [vmem:[%s2186_s0 + $0x28] sm:$0xff]  ;;  %v1622_v8 = vcombine.low %v44_v60, %v52_v61  ;;  %v1641_v15 = vcombine.high %v61_v11, %v61_v11  ;;  %v1643_v16 = vcombine.high %v62_v12, %v62_v12  ;;  %v45_v19 = vld [vmem:[%s2186_s0 + $0xb0] sm:$0xff] }
   0xc   :  { %1585 = vperm.xlu0 %1810, %v1582_v54   ;;  %v298_v62 = vsel %vm272_vm0, %v1636_v56, 0  ;;  %v304_v63 = vsel %vm272_vm0, %v1638_v57, 0  ;;  %v1621_v0 = vcombine.high %v43_v58, %v51_v59  ;;  %v27_v2 = vld [vmem:[%s2186_s0 + $0x20] sm:$0xff]  ;;  %v36_v6 = vld [vmem:[%s2186_s0 + $0x68] sm:$0xff]  ;;  %v1620_v7 = vcombine.low %v43_v58, %v51_v59  ;;  %v53_v20 = vld [vmem:[%s2186_s0 + $0xf0] sm:$0xff] }
   0xd   :  { %336 = vmatpush1.bf16.msra.mxu0 %v1596_v25  ;;  %379 = vmatpush1.bf16.msra.mxu1 %v1598_v26  ;;  %v35_v4 = vld [vmem:[%s2186_s0 + $0x60] sm:$0xff]  ;;  %v1607_v10 = vcombine.high %v28_v5, %v36_v6  ;;  %v1606_v14 = vcombine.low %v28_v5, %v36_v6  ;;  %v1640_v17 = vcombine.low %v61_v11, %v61_v11  ;;  %v46_v21 = vld [vmem:[%s2186_s0 + $0xb8] sm:$0xff] }
   0xe   :  { %1648 = vmatprep.subr.msk.bf16.mxu0 %vm272_vm0, %v1633_v27  ;;  %1650 = vmatprep.subr.msk.bf16.mxu1 %vm272_vm0, %v1635_v28  ;;  %v1605_v9 = vcombine.high %v27_v2, %v35_v4  ;;  %v1604_v13 = vcombine.low %v27_v2, %v35_v4  ;;  %v1642_v18 = vcombine.low %v62_v12, %v62_v12  ;;  %v54_v22 = vld [vmem:[%s2186_s0 + $0xf8] sm:$0xff]  ;;  %v29_v27 = vld [vmem:[%s2186_s0 + $0x30] sm:$0xff] }
   0xf   :  { %v310_v23 = vsel %vm272_vm0, %v1640_v17, 0  ;;  %v1625_v25 = vcombine.high %v45_v19, %v53_v20  ;;  %v1627_v26 = vcombine.high %v46_v21, %v54_v22  ;;  %v37_v28 = vld [vmem:[%s2186_s0 + $0x70] sm:$0xff]  ;;  %v30_v29 = vld [vmem:[%s2186_s0 + $0x38] sm:$0xff]  ;;  %v1624_v31 = vcombine.low %v45_v19, %v53_v20 }
  0x10   :  { %1645 = vmatmul.mubr.msk.bf16.vlgmr.msra.gmra.mxu0 %vm268_vm1, %v1919_v35  ;;  %1647 = vmatmul.mubr.msk.bf16.vlgmr.msra.gmra.mxu1 %vm268_vm1, %v1919_v35  ;;  %v316_v24 = vsel %vm272_vm0, %v1642_v18, 0  ;;  %v38_v30 = vld [vmem:[%s2186_s0 + $0x78] sm:$0xff]  ;;  %v1626_v32 = vcombine.low %v46_v21, %v54_v22  ;;  %v1609_v33 = vcombine.high %v29_v27, %v37_v28 }
  0x11   :  { %418 = vmatpush1.bf16.msra.mxu0 %v286_v36  ;;  %461 = vmatpush1.bf16.msra.mxu1 %v292_v37  ;;  %v1611_v34 = vcombine.high %v30_v29, %v38_v30  ;;  %v1608_v36 = vcombine.low %v29_v27, %v37_v28  ;;  %v1610_v37 = vcombine.low %v30_v29, %v38_v30 }
  0x12   :  { %419 = vmatprep.subr.bf16.mxu0 %v1617_v38  ;;  %462 = vmatprep.subr.bf16.mxu1 %v1619_v39  ;;  %v1829_v38 = vmov 0.0  }
  0x13   :  { %439 = vmatprep.mubr.bf16.mxu0 %v1828_v3  ;;  %482 = vmatprep.mubr.bf16.mxu1 %v1828_v3 }
  0x15   :  { %420 = vmatpush1.bf16.msra.mxu0 %v1616_v44  ;;  %463 = vmatpush1.bf16.msra.mxu1 %v1618_v45 }
  0x16   :  { %421 = vmatprep.subr.bf16.mxu0 %v1601_v47  ;;  %464 = vmatprep.subr.bf16.mxu1 %v1603_v48 }
  0x19   :  { %422 = vmatpush1.bf16.msra.mxu0 %v1600_v51  ;;  %465 = vmatpush1.bf16.msra.mxu1 %v1602_v52 }
  0x1a   :  { %1652 = vmatprep.subr.msk.bf16.mxu0 %vm272_vm0, %v1637_v53  ;;  %1654 = vmatprep.subr.msk.bf16.mxu1 %vm272_vm0, %v1639_v55 }
  0x1c   :  { %1649 = vmatmul.mubr.msk.bf16.vlgmr.msra.gmra.mxu0 %vm268_vm1, %v1919_v35  ;;  %1651 = vmatmul.mubr.msk.bf16.vlgmr.msra.gmra.mxu1 %vm268_vm1, %v1919_v35 }
  0x1d   :  { %504 = vmatpush1.bf16.msra.mxu0 %v298_v62  ;;  %547 = vmatpush1.bf16.msra.mxu1 %v304_v63 }
  0x1e   :  { %505 = vmatprep.subr.bf16.mxu0 %v1621_v0  ;;  %548 = vmatprep.subr.bf16.mxu1 %v1623_v1 }
  0x1f   :  { %525 = vmatprep.mubr.bf16.mxu0 %v1828_v3  ;;  %568 = vmatprep.mubr.bf16.mxu1 %v1828_v3 }
  0x21   :  { %506 = vmatpush1.bf16.msra.mxu0 %v1620_v7  ;;  %549 = vmatpush1.bf16.msra.mxu1 %v1622_v8 }
  0x22   :  { %507 = vmatprep.subr.bf16.mxu0 %v1605_v9  ;;  %550 = vmatprep.subr.bf16.mxu1 %v1607_v10 }
  0x25   :  { %508 = vmatpush1.bf16.msra.mxu0 %v1604_v13  ;;  %551 = vmatpush1.bf16.msra.mxu1 %v1606_v14 }
  0x26   :  { %1656 = vmatprep.subr.msk.bf16.mxu0 %vm272_vm0, %v1641_v15  ;;  %1658 = vmatprep.subr.msk.bf16.mxu1 %vm272_vm0, %v1643_v16 }
  0x28   :  { %1653 = vmatmul.mubr.msk.bf16.vlgmr.msra.gmra.mxu0 %vm268_vm1, %v1919_v35  ;;  %1655 = vmatmul.mubr.msk.bf16.vlgmr.msra.gmra.mxu1 %vm268_vm1, %v1919_v35 }
  0x29   :  { %590 = vmatpush1.bf16.msra.mxu0 %v310_v23  ;;  %633 = vmatpush1.bf16.msra.mxu1 %v316_v24 }
  0x2a   :  { %591 = vmatprep.subr.bf16.mxu0 %v1625_v25  ;;  %634 = vmatprep.subr.bf16.mxu1 %v1627_v26  ;;  %v2047_v26 = vld [vmem:[%s2190_s3] sm:$0xf] }
  0x2b   :  { %611 = vmatprep.mubr.bf16.mxu0 %v1828_v3  ;;  %654 = vmatprep.mubr.bf16.mxu1 %v1828_v3 }
  0x2d   :  { %592 = vmatpush1.bf16.msra.mxu0 %v1624_v31  ;;  %635 = vmatpush1.bf16.msra.mxu1 %v1626_v32 }
  0x2e   :  { %593 = vmatprep.subr.bf16.mxu0 %v1609_v33  ;;  %636 = vmatprep.subr.bf16.mxu1 %v1611_v34  ;;  %v2054_v33 = vld [vmem:[%s2190_s3 + $0x4] sm:$0xf] }
  0x31   :  { %594 = vmatpush1.bf16.msra.mxu0 %v1608_v36  ;;  %637 = vmatpush1.bf16.msra.mxu1 %v1610_v37 }
  0x32   :  { %1717 = vmatprep.subr.bf16.mxu1 %v1829_v38  ;;  %1711 = vmatprep.subr.bf16.mxu0 %v1829_v38 }
  0x34   :  { %1657 = vmatmul.mubr.msk.bf16.vlgmr.msra.gmra.mxu0 %vm268_vm1, %v1919_v35  ;;  %1659 = vmatmul.mubr.msk.bf16.vlgmr.msra.gmra.mxu1 %vm268_vm1, %v1919_v35 }
  0x35   :  { %1713 = vmatprep.mubr.msk.bf16.mxu0 %vm1830_vm2, %v1829_v38  ;;  %1719 = vmatprep.mubr.msk.bf16.mxu1 %vm1830_vm2, %v1829_v38 }
  0x83   :  { %v2039_v52 = vpop.permute.xlu0 %812 }
  0xd0   :  { %v355_v3 = vpop.f32.mrf.mxu0  ;;  %v398_v39 = vpop.f32.mrf.mxu1 }
  0xd1   :  { %v681_v42 = vrot.slane %v355_v3, 4  ;;  %v683_v57 = vrot.slane %v398_v39, 4 }
  0xd2   :  { %v357_v40 = vpop.f32.mrf.mxu0  ;;  %v400_v41 = vpop.f32.mrf.mxu1 }
  0xd3   :  { %v682_v35 = vrot.slane %v357_v40, 4  ;;  %v713_v48 = vmax.f32 %v355_v3, %v681_v42  ;;  %v684_v51 = vrot.slane %v400_v41, 4  ;;  %v715_v6 = vmax.f32 %v398_v39, %v683_v57 }
  0xd4   :  { %v359_v43 = vpop.f32.mrf.mxu0  ;;  %v402_v44 = vpop.f32.mrf.mxu1 }
  0xd5   :  { %v745_v45 = vrot.slane %v359_v43, 4  ;;  %v714_v53 = vmax.f32 %v357_v40, %v682_v35  ;;  %v747_v59 = vrot.slane %v402_v44, 4  ;;  %v716_v63 = vmax.f32 %v400_v41, %v684_v51 }
  0xd6   :  { %v361_v46 = vpop.f32.mrf.mxu0  ;;  %v404_v47 = vpop.f32.mrf.mxu1 }
  0xd7   :  { %v777_v49 = vmax.f32 %v359_v43, %v745_v45  ;;  %v746_v50 = vrot.slane %v361_v46, 4  ;;  %v748_v56 = vrot.slane %v404_v47, 4  ;;  %v779_v7 = vmax.f32 %v402_v44, %v747_v59 }
  0xd9   :  { %v793_v54 = vmax.f32 %v713_v48, %v777_v49  ;;  %v778_v55 = vmax.f32 %v361_v46, %v746_v50  ;;  %v780_v0 = vmax.f32 %v404_v47, %v748_v56  ;;  %v795_v22 = vmax.f32 %v715_v6, %v779_v7 }
  0xdb   :  { %v794_v58 = vmax.f32 %v714_v53, %v778_v55  ;;  %v815_v60 = vadd.f32 %v2039_v52, %v793_v54  ;;  %v796_v13 = vmax.f32 %v716_v63, %v780_v0  ;;  %v817_v40 = vadd.f32 %v2039_v52, %v795_v22 }
  0xdc   :  { %v441_v61 = vpop.f32.mrf.mxu0  ;;  %v484_v62 = vpop.f32.mrf.mxu1 }
  0xdd   :  { %v831_v1 = vmax.f32 %v815_v60, 0.0  ;;  %v816_v2 = vadd.f32 %v2039_v52, %v794_v58  ;;  %v685_v8 = vrot.slane %v441_v61, 4  ;;  %v687_v16 = vrot.slane %v484_v62, 4 }
  0xde   :  { %v443_v4 = vpop.f32.mrf.mxu0  ;;  %v486_v5 = vpop.f32.mrf.mxu1  ;;  %v818_v37 = vadd.f32 %v2039_v52, %v796_v13  ;;  %v833_v51 = vmax.f32 %v817_v40, 0.0 }
  0xdf   :  { %v847_v11 = vpack.c.bf16 %v831_v1, %v831_v1  ;;  %v832_v12 = vmax.f32 %v816_v2, 0.0  ;;  %v686_v14 = vrot.slane %v443_v4, 4  ;;  %v717_v23 = vmax.f32 %v441_v61, %v685_v8 }
  0xe0   :  { %v445_v9 = vpop.f32.mrf.mxu0  ;;  %v488_v10 = vpop.f32.mrf.mxu1  ;;  %v688_v27 = vrot.slane %v486_v5, 4  ;;  %v719_v34 = vmax.f32 %v484_v62, %v687_v16  ;;  %v834_v48 = vmax.f32 %v818_v37, 0.0 }
  0xe1   :  { %v749_v15 = vrot.slane %v445_v9, 4  ;;  %v751_v17 = vrot.slane %v488_v10, 4  ;;  %v917_v20 = vsel %vm272_vm0, %v847_v11, 0  ;;  %v848_v21 = vpack.c.bf16 %v832_v12, %v832_v12  ;;  %v2088_v11 = vld [vmem:[%s2190_s3 + $0xc] sm:$0xf] }
  0xe2   :  { %v447_v18 = vpop.f32.mrf.mxu0  ;;  %v490_v19 = vpop.f32.mrf.mxu1  ;;  %1718 = vmatpush3.bf16.msra.mxu1 %v917_v20  ;;  %v718_v30 = vmax.f32 %v443_v4, %v686_v14  ;;  %v720_v41 = vmax.f32 %v486_v5, %v688_v27  ;;  %v850_v63 = vpack.c.bf16 %v834_v48, %v834_v48  ;;  %v2080_v4 = vld [vmem:[%s2190_s3 + $0x8] sm:$0xf]  ;;  %v849_v5 = vpack.c.bf16 %v833_v51, %v833_v51 }
  0xe3   :  { %v781_v24 = vmax.f32 %v445_v9, %v749_v15  ;;  %v750_v25 = vrot.slane %v447_v18, 4  ;;  %v752_v28 = vrot.slane %v490_v19, 4  ;;  %v871_v29 = vsel %vm272_vm0, %v848_v21, 0  ;;  %1729 = vmatprep.subr.bf16.mxu1 %v1829_v38 }
  0xe4   :  { %1712 = vmatpush3.bf16.msra.mxu0 %v871_v29  ;;  %v783_v36 = vmax.f32 %v488_v10, %v751_v17  ;;  %v1058_v12 = vsel %vm272_vm0, %v850_v63, 0 }
  0xe5   :  { %v797_v31 = vmax.f32 %v717_v23, %v781_v24  ;;  %v782_v32 = vmax.f32 %v447_v18, %v750_v25  ;;  %1720 = vmatmul.mubr.msk.bf16.vlgmr.msra.gmra.mxu1 %vm866_vm3, %v2047_v26  ;;  %1723 = vmatprep.subr.bf16.mxu0 %v1829_v38  ;;  %v784_v42 = vmax.f32 %v490_v19, %v752_v28  ;;  %v1101_v18 = vsel %vm272_vm0, %v849_v5, 0 }
  0xe6   :  { %1731 = vmatprep.mubr.msk.bf16.mxu1 %vm1830_vm2, %v1829_v38  ;;  %v799_v45 = vmax.f32 %v719_v34, %v783_v36 }
  0xe7   :  { %v819_v3 = vadd.f32 %v2039_v52, %v797_v31  ;;  %v798_v39 = vmax.f32 %v718_v30, %v782_v32  ;;  %1714 = vmatmul.mubr.msk.bf16.vlgmr.msra.gmra.mxu0 %vm866_vm3, %v2054_v33  ;;  %v800_v53 = vmax.f32 %v720_v41, %v784_v42 }
  0xe8   :  { %v527_v43 = vpop.f32.mrf.mxu0  ;;  %v2064_v44 = vpop.f32.mrf.mxu1  ;;  %1725 = vmatprep.mubr.msk.bf16.mxu0 %vm1830_vm2, %v1829_v38  ;;  %v821_v59 = vadd.f32 %v2039_v52, %v799_v45 }
  0xe9   :  { %v820_v35 = vadd.f32 %v2039_v52, %v798_v39  ;;  %v835_v47 = vmax.f32 %v819_v3, 0.0  ;;  %v689_v54 = vrot.slane %v527_v43, 4  ;;  %v822_v6 = vadd.f32 %v2039_v52, %v800_v53 }
  0xea   :  { %v529_v46 = vpop.f32.mrf.mxu0  ;;  %v2071_v50 = vpop.f32.mrf.mxu1  ;;  %v837_v13 = vmax.f32 %v821_v59, 0.0  ;;  %v691_v37 = vrot.slane %v2064_v44, 4 }
  0xeb   :  { %v690_v49 = vrot.slane %v529_v46, 4  ;;  %v851_v56 = vpack.c.bf16 %v835_v47, %v835_v47  ;;  %v836_v57 = vmax.f32 %v820_v35, 0.0  ;;  %v721_v7 = vmax.f32 %v527_v43, %v689_v54 }
  0xec   :  { %v531_v55 = vpop.f32.mrf.mxu0  ;;  %v2075_v1 = vpop.f32.mrf.mxu1  ;;  %v838_v19 = vmax.f32 %v822_v6, 0.0  ;;  %v853_v24 = vpack.c.bf16 %v837_v13, %v837_v13  ;;  %v692_v30 = vrot.slane %v2071_v50, 4 }
  0xed   :  { %v753_v58 = vrot.slane %v531_v55, 4  ;;  %v965_v61 = vsel %vm272_vm0, %v851_v56, 0  ;;  %v852_v62 = vpack.c.bf16 %v836_v57, %v836_v57  ;;  %v722_v0 = vmax.f32 %v529_v46, %v690_v49 }
  0xee   :  { %v533_v60 = vpop.f32.mrf.mxu0  ;;  %1724 = vmatpush3.bf16.msra.mxu0 %v965_v61  ;;  %v576_v15 = vpop.f32.mrf.mxu1  ;;  %v854_v29 = vpack.c.bf16 %v838_v19, %v838_v19  ;;  %v1144_v3 = vsel %vm272_vm0, %v853_v24, 0  ;;  %v755_v41 = vrot.slane %v2075_v1, 4  ;;  %v724_v47 = vmax.f32 %v2071_v50, %v692_v30 }
  0xef   :  { %v754_v2 = vrot.slane %v533_v60, 4  ;;  %v785_v8 = vmax.f32 %v531_v55, %v753_v58  ;;  %v1014_v9 = vsel %vm272_vm0, %v852_v62, 0  ;;  %1735 = vmatprep.subr.bf16.mxu0 %v1829_v38  ;;  %v756_v31 = vrot.slane %v576_v15, 4 }
  0xf0   :  { %1730 = vmatpush3.bf16.msra.mxu1 %v1014_v9  ;;  %v1188_v45 = vsel %vm272_vm0, %v854_v29, 0  ;;  %v723_v55 = vmax.f32 %v2064_v44, %v691_v37  ;;  %v787_v56 = vmax.f32 %v2075_v1, %v755_v41 }
  0xf1   :  { %v786_v10 = vmax.f32 %v533_v60, %v754_v2  ;;  %1726 = vmatmul.mubr.msk.bf16.vlgmr.msra.gmra.mxu0 %vm866_vm3, %v2080_v4  ;;  %1741 = vmatprep.subr.bf16.mxu1 %v1829_v38  ;;  %v801_v16 = vmax.f32 %v721_v7, %v785_v8  ;;  %v788_v48 = vmax.f32 %v576_v15, %v756_v31 }
  0xf2   :  { %1736 = vmatpush3.bf16.msra.mxu0 %v1058_v12  ;;  %1737 = vmatprep.mubr.msk.bf16.mxu0 %vm1830_vm2, %v1829_v38  ;;  %v803_v44 = vmax.f32 %v723_v55, %v787_v56 }
  0xf3   :  { %v802_v14 = vmax.f32 %v722_v0, %v786_v10  ;;  %1732 = vmatmul.mubr.msk.bf16.vlgmr.msra.gmra.mxu1 %vm866_vm3, %v2088_v11  ;;  %1747 = vmatprep.subr.bf16.mxu0 %v1829_v38  ;;  %v823_v27 = vadd.f32 %v2039_v52, %v801_v16  ;;  %v804_v50 = vmax.f32 %v724_v47, %v788_v48 }
  0xf4   :  { %v613_v17 = vpop.f32.mrf.mxu0  ;;  %v2099_v21 = vpop.f32.mrf.mxu1  ;;  %1742 = vmatpush3.bf16.msra.mxu1 %v1101_v18  ;;  %1743 = vmatprep.mubr.msk.bf16.mxu1 %vm1830_vm2, %v1829_v38  ;;  %v825_v13 = vadd.f32 %v2039_v52, %v803_v44 }
  0xf5   :  { %v693_v20 = vrot.slane %v613_v17, 4  ;;  %v824_v22 = vadd.f32 %v2039_v52, %v802_v14  ;;  %1753 = vmatprep.subr.bf16.mxu1 %v1829_v38  ;;  %v839_v46 = vmax.f32 %v823_v27, 0.0  ;;  %v695_v62 = vrot.slane %v2099_v21, 4 }
  0xf6   :  { %v615_v23 = vpop.f32.mrf.mxu0  ;;  %v658_v34 = vpop.f32.mrf.mxu1  ;;  %v826_v8 = vadd.f32 %v2039_v52, %v804_v50 }
  0xf7   :  { %v694_v25 = vrot.slane %v615_v23, 4  ;;  %v725_v32 = vmax.f32 %v613_v17, %v693_v20  ;;  %v840_v40 = vmax.f32 %v824_v22, 0.0  ;;  %v855_v59 = vpack.c.bf16 %v839_v46, %v839_v46 }
  0xf8   :  { %v617_v28 = vpop.f32.mrf.mxu0  ;;  %v660_v51 = vpop.f32.mrf.mxu1  ;;  %v696_v1 = vrot.slane %v658_v34, 4  ;;  %v727_v9 = vmax.f32 %v2099_v21, %v695_v62  ;;  %v842_v19 = vmax.f32 %v826_v8, 0.0  ;;  %v841_v22 = vmax.f32 %v825_v13, 0.0 }
  0xf9   :  { %v757_v36 = vrot.slane %v617_v28, 4  ;;  %1738 = vmatmul.mubr.msk.bf16.vlgmr.msra.gmra.mxu0 %vm866_vm3, %v2054_v33  ;;  %v726_v42 = vmax.f32 %v615_v23, %v694_v25  ;;  %v856_v54 = vpack.c.bf16 %v840_v40, %v840_v40  ;;  %v759_v63 = vrot.slane %v660_v51, 4 }
  0xfa   :  { %v619_v39 = vpop.f32.mrf.mxu0  ;;  %1748 = vmatpush3.bf16.msra.mxu0 %v1144_v3  ;;  %1749 = vmatprep.mubr.msk.bf16.mxu0 %vm1830_vm2, %v1829_v38  ;;  %v662_v61 = vpop.f32.mrf.mxu1  ;;  %v1276_v6 = vsel %vm272_vm0, %v855_v59, 0  ;;  %v728_v14 = vmax.f32 %v658_v34, %v696_v1  ;;  %v858_v24 = vpack.c.bf16 %v842_v19, %v842_v19  ;;  %v857_v27 = vpack.c.bf16 %v841_v22, %v841_v22 }
  0xfb   :  { %v789_v43 = vmax.f32 %v617_v28, %v757_v36  ;;  %v758_v35 = vrot.slane %v619_v39, 4  ;;  %1744 = vmatmul.mubr.msk.bf16.vlgmr.msra.gmra.mxu1 %vm866_vm3, %v2047_v26  ;;  %1759 = vmatprep.subr.bf16.mxu0 %v1829_v38  ;;  %v1233_v0 = vsel %vm272_vm0, %v856_v54, 0  ;;  %v760_v5 = vrot.slane %v662_v61, 4 }
  0xfc   :  { %1754 = vmatpush3.bf16.msra.mxu1 %v1188_v45  ;;  %1755 = vmatprep.mubr.msk.bf16.mxu1 %vm1830_vm2, %v1829_v38  ;;  %v791_v10 = vmax.f32 %v660_v51, %v759_v63  ;;  %v1408_v28 = vsel %vm272_vm0, %v858_v24, 0  ;;  %v1451_v30 = vsel %vm272_vm0, %v857_v27, 0 }
  0xfd   :  { %v805_v49 = vmax.f32 %v725_v32, %v789_v43  ;;  %v790_v53 = vmax.f32 %v619_v39, %v758_v35  ;;  %1765 = vmatprep.subr.bf16.mxu1 %v1829_v38  ;;  %v792_v15 = vmax.f32 %v662_v61, %v760_v5 }
  0xfe   :  { %v807_v17 = vmax.f32 %v727_v9, %v791_v10 }
  0xff   :  { %v827_v57 = vadd.f32 %v2039_v52, %v805_v49  ;;  %v806_v58 = vmax.f32 %v726_v42, %v790_v53  ;;  %v808_v20 = vmax.f32 %v728_v14, %v792_v15 }
 0x100   :  { %v829_v23 = vadd.f32 %v2039_v52, %v807_v17 }
 0x101   :  { %v828_v60 = vadd.f32 %v2039_v52, %v806_v58  ;;  %1750 = vmatmul.mubr.msk.bf16.vlgmr.msra.gmra.mxu0 %vm866_vm3, %v2080_v4  ;;  %v843_v2 = vmax.f32 %v827_v57, 0.0  ;;  %v830_v25 = vadd.f32 %v2039_v52, %v808_v20 }
 0x102   :  { %1760 = vmatpush3.bf16.msra.mxu0 %v1233_v0  ;;  %1761 = vmatprep.mubr.msk.bf16.mxu0 %vm1830_vm2, %v1829_v38  ;;  %v845_v29 = vmax.f32 %v829_v23, 0.0 }
 0x103   :  { %1756 = vmatmul.mubr.msk.bf16.vlgmr.msra.gmra.mxu1 %vm866_vm3, %v2088_v11  ;;  %1771 = vmatprep.subr.bf16.mxu0 %v1829_v38  ;;  %v844_v7 = vmax.f32 %v828_v60, 0.0  ;;  %v859_v12 = vpack.c.bf16 %v843_v2, %v843_v2  ;;  %v846_v31 = vmax.f32 %v830_v25, 0.0 }
 0x104   :  { %1766 = vmatpush3.bf16.msra.mxu1 %v1276_v6  ;;  %1767 = vmatprep.mubr.msk.bf16.mxu1 %vm1830_vm2, %v1829_v38  ;;  %v861_v52 = vpack.c.bf16 %v845_v29, %v845_v29 }
 0x105   :  { %1777 = vmatprep.subr.bf16.mxu1 %v1829_v38  ;;  %v860_v16 = vpack.c.bf16 %v844_v7, %v844_v7  ;;  %v1319_v18 = vsel %vm272_vm0, %v859_v12, 0  ;;  %v862_v32 = vpack.c.bf16 %v846_v31, %v846_v31 }
 0x106   :  { %v1494_v34 = vsel %vm272_vm0, %v861_v52, 0 }
 0x107   :  { %v1363_v21 = vsel %vm272_vm0, %v860_v16, 0  ;;  %v1538_v36 = vsel %vm272_vm0, %v862_v32, 0 }
 0x109   :  { %1762 = vmatmul.mubr.msk.bf16.vlgmr.msra.gmra.mxu0 %vm866_vm3, %v2054_v33 }
 0x10a   :  { %1772 = vmatpush3.bf16.msra.mxu0 %v1319_v18  ;;  %1773 = vmatprep.mubr.msk.bf16.mxu0 %vm1830_vm2, %v1829_v38 }
 0x10b   :  { %1768 = vmatmul.mubr.msk.bf16.vlgmr.msra.gmra.mxu1 %vm866_vm3, %v2047_v26  ;;  %1783 = vmatprep.subr.bf16.mxu0 %v1829_v38 }
 0x10c   :  { %1778 = vmatpush3.bf16.msra.mxu1 %v1363_v21  ;;  %1779 = vmatprep.mubr.msk.bf16.mxu1 %vm1830_vm2, %v1829_v38 }
 0x10d   :  { %1789 = vmatprep.subr.bf16.mxu1 %v1829_v38 }
 0x111   :  { %1774 = vmatmul.mubr.msk.bf16.vlgmr.msra.gmra.mxu0 %vm866_vm3, %v2080_v4 }
 0x112   :  { %1784 = vmatpush3.bf16.msra.mxu0 %v1408_v28  ;;  %1785 = vmatprep.mubr.msk.bf16.mxu0 %vm1830_vm2, %v1829_v38 }
 0x113   :  { %1780 = vmatmul.mubr.msk.bf16.vlgmr.msra.gmra.mxu1 %vm866_vm3, %v2088_v11  ;;  %1795 = vmatprep.subr.bf16.mxu0 %v1829_v38 }
 0x114   :  { %1790 = vmatpush3.bf16.msra.mxu1 %v1451_v30  ;;  %1791 = vmatprep.mubr.msk.bf16.mxu1 %vm1830_vm2, %v1829_v38 }
 0x115   :  { %1801 = vmatprep.subr.bf16.mxu1 %v1829_v38 }
 0x119   :  { %1786 = vmatmul.mubr.msk.bf16.vlgmr.msra.gmra.mxu0 %vm866_vm3, %v2054_v33 }
 0x11a   :  { %1796 = vmatpush3.bf16.msra.mxu0 %v1494_v34  ;;  %1797 = vmatprep.mubr.msk.bf16.mxu0 %vm1830_vm2, %v1829_v38 }
 0x11b   :  { %1792 = vmatmul.mubr.msk.bf16.vlgmr.msra.gmra.mxu1 %vm866_vm3, %v2047_v26 }
 0x11c   :  { %1802 = vmatpush3.bf16.msra.mxu1 %v1538_v36  ;;  %1803 = vmatprep.mubr.msk.bf16.mxu1 %vm1830_vm2, %v1829_v38 }
 0x121   :  { %1798 = vmatmul.mubr.msk.bf16.vlgmr.msra.gmra.mxu0 %vm866_vm3, %v2080_v4 }
 0x123   :  { %1804 = vmatmul.mubr.msk.bf16.vlgmr.msra.gmra.mxu1 %vm866_vm3, %v2088_v11 }
 0x1a5   :  { %v953_v33 = vpop.f32.mrf.mxu1 }
 0x1a7   :  { %v907_v37 = vpop.f32.mrf.mxu0  ;;  %v1721_v3 = vpop.f32.mrf.mxu1 }
 0x1a8   :  { %v954_v21 = vadd.f32 %v953_v33, %v907_v37 }
 0x1a9   :  { %v1715_v39 = vpop.f32.mrf.mxu0  ;;  %v956_v40 = vpop.f32.mrf.mxu1 }
 0x1ab   :  { %v910_v41 = vpop.f32.mrf.mxu0  ;;  %v1722_v42 = vpop.f32.mrf.mxu1 }
 0x1ad   :  { %v1716_v26 = vpop.f32.mrf.mxu0 }
 0x1b1   :  { %v1001_v43 = vpop.f32.mrf.mxu0 }
 0x1b2   :  { %v1007_v27 = vadd.f32 %v1001_v43, %v954_v21  ;;  %v1586_v43 = vpop.permute.xlu0 %1585 }
 0x1b3   :  { %v1727_v35 = vpop.f32.mrf.mxu0  ;;  %v1050_v45 = vpop.f32.mrf.mxu1 }
 0x1b4   :  { %v1056_v34 = vadd.f32 %v1050_v45, %v1007_v27 }
 0x1b5   :  { %v1004_v46 = vpop.f32.mrf.mxu0  ;;  %v1733_v47 = vpop.f32.mrf.mxu1 }
 0x1b7   :  { %v1728_v38 = vpop.f32.mrf.mxu0  ;;  %v1053_v48 = vpop.f32.mrf.mxu1 }
 0x1b9   :  { %v1734_v49 = vpop.f32.mrf.mxu1  ;;  %v1094_v4 = vpop.f32.mrf.mxu0 }
 0x1bb   :  { %v1739_v51 = vpop.f32.mrf.mxu0  ;;  %v1137_v53 = vpop.f32.mrf.mxu1 }
 0x1bc   :  { %v1138_v18 = vadd.f32 %v1137_v53, %v1094_v4 }
 0x1bd   :  { %v1097_v11 = vpop.f32.mrf.mxu0  ;;  %v1745_v54 = vpop.f32.mrf.mxu1 }
 0x1bf   :  { %v1740_v55 = vpop.f32.mrf.mxu0  ;;  %v1140_v56 = vpop.f32.mrf.mxu1 }
 0x1c1   :  { %v1746_v57 = vpop.f32.mrf.mxu1  ;;  %v1180_v58 = vpop.f32.mrf.mxu0 }
 0x1c2   :  { %v1186_v22 = vadd.f32 %v1180_v58, %v1138_v18 }
 0x1c3   :  { %v1751_v59 = vpop.f32.mrf.mxu0  ;;  %v1224_v50 = vpop.f32.mrf.mxu1 }
 0x1c4   :  { %v1230_v31 = vadd.f32 %v1224_v50, %v1186_v22 }
 0x1c5   :  { %v1183_v60 = vpop.f32.mrf.mxu0  ;;  %v1757_v61 = vpop.f32.mrf.mxu1 }
 0x1c6   :  { %v1231_v41 = vmax.f32 %v1056_v34, %v1230_v31 }
 0x1c7   :  { %v1752_v62 = vpop.f32.mrf.mxu0  ;;  %v1227_v63 = vpop.f32.mrf.mxu1 }
 0x1c9   :  { %v1758_v0 = vpop.f32.mrf.mxu1  ;;  %v1269_v2 = vpop.f32.mrf.mxu0 }
 0x1cb   :  { %v1763_v44 = vpop.f32.mrf.mxu0  ;;  %v1312_v1 = vpop.f32.mrf.mxu1 }
 0x1cc   :  { %v1313_v23 = vadd.f32 %v1312_v1, %v1269_v2 }
 0x1cd   :  { %v1272_v5 = vpop.f32.mrf.mxu0  ;;  %v1769_v6 = vpop.f32.mrf.mxu1 }
 0x1cf   :  { %v1764_v7 = vpop.f32.mrf.mxu0  ;;  %v1315_v8 = vpop.f32.mrf.mxu1 }
 0x1d1   :  { %v1770_v9 = vpop.f32.mrf.mxu1  ;;  %v1355_v10 = vpop.f32.mrf.mxu0 }
 0x1d2   :  { %v1361_v28 = vadd.f32 %v1355_v10, %v1313_v23 }
 0x1d3   :  { %v1775_v12 = vpop.f32.mrf.mxu0  ;;  %v1399_v13 = vpop.f32.mrf.mxu1 }
 0x1d4   :  { %v1405_v36 = vadd.f32 %v1399_v13, %v1361_v28 }
 0x1d5   :  { %v1358_v14 = vpop.f32.mrf.mxu0  ;;  %v1781_v15 = vpop.f32.mrf.mxu1 }
 0x1d6   :  { %v1406_v37 = vmax.f32 %v1231_v41, %v1405_v36 }
 0x1d7   :  { %v1776_v16 = vpop.f32.mrf.mxu0  ;;  %v1402_v17 = vpop.f32.mrf.mxu1 }
 0x1d9   :  { %v1782_v19 = vpop.f32.mrf.mxu1  ;;  %v1444_v20 = vpop.f32.mrf.mxu0 }
 0x1db   :  { %v1787_v24 = vpop.f32.mrf.mxu0  ;;  %v1487_v25 = vpop.f32.mrf.mxu1 }
 0x1dc   :  { %v1488_v3 = vadd.f32 %v1487_v25, %v1444_v20 }
 0x1dd   :  { %v1447_v29 = vpop.f32.mrf.mxu0  ;;  %v1793_v30 = vpop.f32.mrf.mxu1 }
 0x1df   :  { %v1788_v52 = vpop.f32.mrf.mxu0  ;;  %v1490_v32 = vpop.f32.mrf.mxu1 }
 0x1e1   :  { %v1794_v39 = vpop.f32.mrf.mxu1  ;;  %v1530_v40 = vpop.f32.mrf.mxu0 }
 0x1e2   :  { %v1536_v42 = vadd.f32 %v1530_v40, %v1488_v3 }
 0x1e3   :  { %v1799_v26 = vpop.f32.mrf.mxu0  ;;  %v1574_v33 = vpop.f32.mrf.mxu1 }
 0x1e4   :  { %v1580_v35 = vadd.f32 %v1574_v33, %v1536_v42 }
 0x1e5   :  { %v1533_v46 = vpop.f32.mrf.mxu0  ;;  %v1805_v47 = vpop.f32.mrf.mxu1 }
 0x1e6   :  { %v1581_v38 = vmax.f32 %v1406_v37, %v1580_v35 }
 0x1e7   :  { %v1800_v48 = vpop.f32.mrf.mxu0  ;;  %v1577_v49 = vpop.f32.mrf.mxu1 }
 0x1e8   :  { %v1588_v4 = vadd.f32 %v1586_v43, %v1581_v38 }
 0x1e9   :  { %v1806_v51 = vpop.f32.mrf.mxu1 }
 0x1ea   :  { %v1589_v53 = vmax.f32 %v1588_v4, 0.0 }
 0x1ec   :  { %1590 = vst [vmem:[%s2191_s5] sm:$0xff] %v1589_v53 }

// kernel: policy_network_cnn_forward.3
= control target key start
LH: loop header
LB: loop body
LE: loop exit
PB: predicated region body
PF: predicated region fallthrough
CT: control target
= control target key end

     0   :  { %v3000_v0 = vmov 0.0   ;;  %v1792_v45 = vmov 0   ;;  %vm506_vm0 = vcmask 261120   ;;  %vm1350_vm1 = vcmask 130048   ;;  %s2994_s0 = inlined_call_operand.vmem [shape: f32[288,128], index: 0, kind: input, shape index: {}]   ;;  %s2995_s1 = inlined_call_operand.vmem [shape: f32[400,288], index: 1, kind: input, shape index: {}]   ;;  %s2996_s2 = inlined_call_operand.vmem [shape: f32[400,1], index: 2, kind: input, shape index: {}]   ;;  %s2997_s4 = inlined_call_operand.vmem [shape: f32[3,1], index: 4, kind: input, shape index: {}]   ;;  %s2998_s3 = inlined_call_operand.vmem [shape: f32[3,400], index: 3, kind: input, shape index: {}]   ;;  %s2999_s5 = inlined_call_operand.vmem [shape: f32[3,128], index: 5, kind: output, shape index: {}]  }
   0x1   :  { %657 = vmatprep.subr.mxu0 %v3000_v0  ;;  %1721 = vmatprep.subr.mxu1 %v3000_v0  ;;  %v185_v1 = vld [vmem:[%s2994_s0 + $0x78] sm:$0xff]  ;;  %v184_v2 = vld [vmem:[%s2994_s0 + $0x70] sm:$0xff]  ;;  %v183_v3 = vld [vmem:[%s2994_s0 + $0x68] sm:$0xff] }
   0x2   :  { %658 = vmatpush1.msra.mxu0 %v185_v1  ;;  %1753 = vmatpush1.msra.mxu1 %v185_v1  ;;  %v182_v4 = vld [vmem:[%s2994_s0 + $0x60] sm:$0xff]  ;;  %v181_v5 = vld [vmem:[%s2994_s0 + $0x58] sm:$0xff]  ;;  %v180_v6 = vld [vmem:[%s2994_s0 + $0x50] sm:$0xff] }
   0x3   :  { %659 = vmatprep.subr.mxu0 %v3000_v0  ;;  %1722 = vmatprep.subr.mxu1 %v3000_v0  ;;  %v179_v7 = vld [vmem:[%s2994_s0 + $0x48] sm:$0xff]  ;;  %v178_v8 = vld [vmem:[%s2994_s0 + $0x40] sm:$0xff]  ;;  %v177_v9 = vld [vmem:[%s2994_s0 + $0x38] sm:$0xff] }
   0x4   :  { %660 = vmatpush1.msra.mxu0 %v184_v2  ;;  %1754 = vmatpush1.msra.mxu1 %v184_v2  ;;  %v176_v10 = vld [vmem:[%s2994_s0 + $0x30] sm:$0xff]  ;;  %v175_v11 = vld [vmem:[%s2994_s0 + $0x28] sm:$0xff]  ;;  %v174_v12 = vld [vmem:[%s2994_s0 + $0x20] sm:$0xff] }
   0x5   :  { %661 = vmatprep.subr.mxu0 %v3000_v0  ;;  %1723 = vmatprep.subr.mxu1 %v3000_v0  ;;  %v173_v13 = vld [vmem:[%s2994_s0 + $0x18] sm:$0xff]  ;;  %v172_v14 = vld [vmem:[%s2994_s0 + $0x10] sm:$0xff]  ;;  %v171_v15 = vld [vmem:[%s2994_s0 + $0x8] sm:$0xff] }
   0x6   :  { %662 = vmatpush1.msra.mxu0 %v183_v3  ;;  %1755 = vmatpush1.msra.mxu1 %v183_v3  ;;  %v170_v16 = vld [vmem:[%s2994_s0] sm:$0xff]  ;;  %v201_v17 = vld [vmem:[%s2994_s0 + $0xf8] sm:$0xff]  ;;  %v200_v18 = vld [vmem:[%s2994_s0 + $0xf0] sm:$0xff] }
   0x7   :  { %663 = vmatprep.subr.mxu0 %v3000_v0  ;;  %1724 = vmatprep.subr.mxu1 %v3000_v0  ;;  %v199_v19 = vld [vmem:[%s2994_s0 + $0xe8] sm:$0xff]  ;;  %v198_v20 = vld [vmem:[%s2994_s0 + $0xe0] sm:$0xff]  ;;  %v197_v21 = vld [vmem:[%s2994_s0 + $0xd8] sm:$0xff] }
   0x8   :  { %664 = vmatpush1.msra.mxu0 %v182_v4  ;;  %1756 = vmatpush1.msra.mxu1 %v182_v4  ;;  %v196_v22 = vld [vmem:[%s2994_s0 + $0xd0] sm:$0xff]  ;;  %v195_v23 = vld [vmem:[%s2994_s0 + $0xc8] sm:$0xff]  ;;  %v194_v24 = vld [vmem:[%s2994_s0 + $0xc0] sm:$0xff] }
   0x9   :  { %665 = vmatprep.subr.mxu0 %v3000_v0  ;;  %1725 = vmatprep.subr.mxu1 %v3000_v0  ;;  %v193_v25 = vld [vmem:[%s2994_s0 + $0xb8] sm:$0xff]  ;;  %v192_v26 = vld [vmem:[%s2994_s0 + $0xb0] sm:$0xff]  ;;  %v191_v27 = vld [vmem:[%s2994_s0 + $0xa8] sm:$0xff] }
   0xa   :  { %666 = vmatpush1.msra.mxu0 %v181_v5  ;;  %1757 = vmatpush1.msra.mxu1 %v181_v5  ;;  %v190_v28 = vld [vmem:[%s2994_s0 + $0xa0] sm:$0xff]  ;;  %v189_v29 = vld [vmem:[%s2994_s0 + $0x98] sm:$0xff]  ;;  %v188_v30 = vld [vmem:[%s2994_s0 + $0x90] sm:$0xff] }
   0xb   :  { %667 = vmatprep.subr.mxu0 %v3000_v0  ;;  %1726 = vmatprep.subr.mxu1 %v3000_v0  ;;  %v187_v31 = vld [vmem:[%s2994_s0 + $0x88] sm:$0xff]  ;;  %v186_v32 = vld [vmem:[%s2994_s0 + $0x80] sm:$0xff]  ;;  %v150_v34 = vld [vmem:[%s2995_s1 + $0x410] sm:$0xff] }
   0xc   :  { %668 = vmatpush1.msra.mxu0 %v180_v6  ;;  %1758 = vmatpush1.msra.mxu1 %v180_v6  ;;  %v21_v33 = vld [vmem:[%s2995_s1 + $0x8] sm:$0xff]  ;;  %v20_v35 = vld [vmem:[%s2995_s1] sm:$0xff]  ;;  %v205_v39 = vld [vmem:[%s2994_s0 + $0x118] sm:$0xff] }
   0xd   :  { %669 = vmatprep.subr.mxu0 %v3000_v0  ;;  %1727 = vmatprep.subr.mxu1 %v3000_v0  ;;  %v149_v36 = vld [vmem:[%s2995_s1 + $0x408] sm:$0xff]  ;;  %v24_v37 = vld [vmem:[%s2995_s1 + $0x20] sm:$0xff]  ;;  %v236_v40 = vld [vmem:[%s2996_s2 + $0xf0] sm:$0xff] }
   0xe   :  { %670 = vmatpush1.msra.mxu0 %v179_v7  ;;  %1759 = vmatpush1.msra.mxu1 %v179_v7  ;;  %v153_v38 = vld [vmem:[%s2995_s1 + $0x428] sm:$0xff]  ;;  %v23_v41 = vld [vmem:[%s2995_s1 + $0x18] sm:$0xff]  ;;  %v152_v42 = vld [vmem:[%s2995_s1 + $0x420] sm:$0xff] }
   0xf   :  { %671 = vmatprep.subr.mxu0 %v3000_v0  ;;  %1728 = vmatprep.subr.mxu1 %v3000_v0  ;;  %v27_v43 = vld [vmem:[%s2995_s1 + $0x38] sm:$0xff]  ;;  %v156_v44 = vld [vmem:[%s2995_s1 + $0x440] sm:$0xff]  ;;  %v204_v46 = vld [vmem:[%s2994_s0 + $0x110] sm:$0xff] }
  0x10   :  { %672 = vmatpush1.msra.mxu0 %v178_v8  ;;  %1760 = vmatpush1.msra.mxu1 %v178_v8  ;;  %v220_v47 = vld [vmem:[%s2996_s2 + $0x70] sm:$0xff]  ;;  %v155_v49 = vld [vmem:[%s2995_s1 + $0x438] sm:$0xff]  ;;  %v203_v52 = vld [vmem:[%s2994_s0 + $0x108] sm:$0xff] }
  0x11   :  { %673 = vmatprep.subr.mxu0 %v3000_v0  ;;  %1729 = vmatprep.subr.mxu1 %v3000_v0  ;;  %v26_v48 = vld [vmem:[%s2995_s1 + $0x30] sm:$0xff]  ;;  %v159_v51 = vld [vmem:[%s2995_s1 + $0x458] sm:$0xff]  ;;  %v219_v54 = vld [vmem:[%s2996_s2 + $0x68] sm:$0xff] }
  0x12   :  { %674 = vmatpush1.msra.mxu0 %v177_v9  ;;  %1761 = vmatpush1.msra.mxu1 %v177_v9  ;;  %v30_v50 = vld [vmem:[%s2995_s1 + $0x50] sm:$0xff]  ;;  %v237_v53 = vld [vmem:[%s2996_s2 + $0xf8] sm:$0xff]  ;;  %v29_v55 = vld [vmem:[%s2995_s1 + $0x48] sm:$0xff] }
  0x13   :  { %675 = vmatprep.subr.mxu0 %v3000_v0  ;;  %1730 = vmatprep.subr.mxu1 %v3000_v0  ;;  %v158_v56 = vld [vmem:[%s2995_s1 + $0x450] sm:$0xff]  ;;  %v33_v57 = vld [vmem:[%s2995_s1 + $0x68] sm:$0xff]  ;;  %v202_v59 = vld [vmem:[%s2994_s0 + $0x100] sm:$0xff] }
  0x14   :  { %676 = vmatpush1.msra.mxu0 %v176_v10  ;;  %1762 = vmatpush1.msra.mxu1 %v176_v10  ;;  %v162_v58 = vld [vmem:[%s2995_s1 + $0x470] sm:$0xff]  ;;  %v221_v60 = vld [vmem:[%s2996_s2 + $0x78] sm:$0xff]  ;;  %v218_v61 = vld [vmem:[%s2996_s2 + $0x60] sm:$0xff] }
  0x15   :  { %677 = vmatprep.subr.mxu0 %v3000_v0  ;;  %1731 = vmatprep.subr.mxu1 %v3000_v0  ;;  %v32_v62 = vld [vmem:[%s2995_s1 + $0x60] sm:$0xff]  ;;  %v161_v63 = vld [vmem:[%s2995_s1 + $0x468] sm:$0xff]  ;;  %v217_v4 = vld [vmem:[%s2996_s2 + $0x58] sm:$0xff] }
  0x16   :  { %678 = vmatpush1.msra.mxu0 %v175_v11  ;;  %1763 = vmatpush1.msra.mxu1 %v175_v11  ;;  %v36_v1 = vld [vmem:[%s2995_s1 + $0x80] sm:$0xff]  ;;  %v165_v2 = vld [vmem:[%s2995_s1 + $0x488] sm:$0xff]  ;;  %v35_v5 = vld [vmem:[%s2995_s1 + $0x78] sm:$0xff] }
  0x17   :  { %679 = vmatprep.subr.mxu0 %v3000_v0  ;;  %1732 = vmatprep.subr.mxu1 %v3000_v0  ;;  %v235_v3 = vld [vmem:[%s2996_s2 + $0xe8] sm:$0xff]  ;;  %v164_v6 = vld [vmem:[%s2995_s1 + $0x480] sm:$0xff]  ;;  %v39_v7 = vld [vmem:[%s2995_s1 + $0x98] sm:$0xff] }
  0x18   :  { %680 = vmatpush1.msra.mxu0 %v174_v12  ;;  %1764 = vmatpush1.msra.mxu1 %v174_v12  ;;  %v168_v8 = vld [vmem:[%s2995_s1 + $0x4a0] sm:$0xff]  ;;  %v216_v10 = vld [vmem:[%s2996_s2 + $0x50] sm:$0xff]  ;;  %v167_v12 = vld [vmem:[%s2995_s1 + $0x498] sm:$0xff] }
  0x19   :  { %681 = vmatprep.subr.mxu0 %v3000_v0  ;;  %1733 = vmatprep.subr.mxu1 %v3000_v0  ;;  %v234_v9 = vld [vmem:[%s2996_s2 + $0xe0] sm:$0xff]  ;;  %v38_v11 = vld [vmem:[%s2995_s1 + $0x90] sm:$0xff] }
  0x1a   :  { %682 = vmatpush1.msra.mxu0 %v173_v13  ;;  %1765 = vmatpush1.msra.mxu1 %v173_v13  ;;  %v42_v13 = vld [vmem:[%s2995_s1 + $0xb0] sm:$0xff] }
  0x1b   :  { %683 = vmatprep.subr.mxu0 %v3000_v0  ;;  %1734 = vmatprep.subr.mxu1 %v3000_v0 }
  0x1c   :  { %684 = vmatpush1.msra.mxu0 %v172_v14  ;;  %1766 = vmatpush1.msra.mxu1 %v172_v14  ;;  %v22_v14 = vld [vmem:[%s2995_s1 + $0x10] sm:$0xff] }
  0x1d   :  { %685 = vmatprep.subr.mxu0 %v3000_v0  ;;  %1735 = vmatprep.subr.mxu1 %v3000_v0 }
  0x1e   :  { %686 = vmatpush1.msra.mxu0 %v171_v15  ;;  %1767 = vmatpush1.msra.mxu1 %v171_v15  ;;  %v233_v15 = vld [vmem:[%s2996_s2 + $0xd8] sm:$0xff] }
  0x1f   :  { %687 = vmatprep.subr.mxu0 %v3000_v0  ;;  %1736 = vmatprep.subr.mxu1 %v3000_v0 }
  0x20   :  { %688 = vmatpush1.msra.mxu0 %v170_v16  ;;  %1768 = vmatpush1.msra.mxu1 %v170_v16  ;;  %v215_v16 = vld [vmem:[%s2996_s2 + $0x48] sm:$0xff] }
  0x21   :  { %689 = vmatprep.subr.mxu0 %v3000_v0  ;;  %1737 = vmatprep.subr.mxu1 %v3000_v0 }
  0x22   :  { %690 = vmatpush2.msra.mxu0 %v201_v17  ;;  %1769 = vmatpush2.msra.mxu1 %v201_v17  ;;  %v41_v17 = vld [vmem:[%s2995_s1 + $0xa8] sm:$0xff] }
  0x23   :  { %691 = vmatprep.subr.mxu0 %v3000_v0  ;;  %1738 = vmatprep.subr.mxu1 %v3000_v0 }
  0x24   :  { %692 = vmatpush2.msra.mxu0 %v200_v18  ;;  %1770 = vmatpush2.msra.mxu1 %v200_v18  ;;  %v25_v18 = vld [vmem:[%s2995_s1 + $0x28] sm:$0xff] }
  0x25   :  { %693 = vmatprep.subr.mxu0 %v3000_v0  ;;  %1739 = vmatprep.subr.mxu1 %v3000_v0 }
  0x26   :  { %694 = vmatpush2.msra.mxu0 %v199_v19  ;;  %1771 = vmatpush2.msra.mxu1 %v199_v19  ;;  %v45_v19 = vld [vmem:[%s2995_s1 + $0xc8] sm:$0xff] }
  0x27   :  { %695 = vmatprep.subr.mxu0 %v3000_v0  ;;  %1740 = vmatprep.subr.mxu1 %v3000_v0 }
  0x28   :  { %696 = vmatpush2.msra.mxu0 %v198_v20  ;;  %1772 = vmatpush2.msra.mxu1 %v198_v20  ;;  %v28_v20 = vld [vmem:[%s2995_s1 + $0x40] sm:$0xff] }
  0x29   :  { %697 = vmatprep.subr.mxu0 %v3000_v0  ;;  %1741 = vmatprep.subr.mxu1 %v3000_v0 }
  0x2a   :  { %698 = vmatpush2.msra.mxu0 %v197_v21  ;;  %1773 = vmatpush2.msra.mxu1 %v197_v21  ;;  %v232_v21 = vld [vmem:[%s2996_s2 + $0xd0] sm:$0xff] }
  0x2b   :  { %699 = vmatprep.subr.mxu0 %v3000_v0  ;;  %1742 = vmatprep.subr.mxu1 %v3000_v0 }
  0x2c   :  { %700 = vmatpush2.msra.mxu0 %v196_v22  ;;  %1774 = vmatpush2.msra.mxu1 %v196_v22  ;;  %v214_v22 = vld [vmem:[%s2996_s2 + $0x40] sm:$0xff] }
  0x2d   :  { %701 = vmatprep.subr.mxu0 %v3000_v0  ;;  %1743 = vmatprep.subr.mxu1 %v3000_v0 }
  0x2e   :  { %702 = vmatpush2.msra.mxu0 %v195_v23  ;;  %1775 = vmatpush2.msra.mxu1 %v195_v23  ;;  %v44_v23 = vld [vmem:[%s2995_s1 + $0xc0] sm:$0xff] }
  0x2f   :  { %703 = vmatprep.subr.mxu0 %v3000_v0  ;;  %1744 = vmatprep.subr.mxu1 %v3000_v0 }
  0x30   :  { %704 = vmatpush2.msra.mxu0 %v194_v24  ;;  %1776 = vmatpush2.msra.mxu1 %v194_v24  ;;  %v31_v24 = vld [vmem:[%s2995_s1 + $0x58] sm:$0xff] }
  0x31   :  { %705 = vmatprep.subr.mxu0 %v3000_v0  ;;  %1745 = vmatprep.subr.mxu1 %v3000_v0 }
  0x32   :  { %706 = vmatpush2.msra.mxu0 %v193_v25  ;;  %1777 = vmatpush2.msra.mxu1 %v193_v25  ;;  %v48_v25 = vld [vmem:[%s2995_s1 + $0xe0] sm:$0xff] }
  0x33   :  { %707 = vmatprep.subr.mxu0 %v3000_v0  ;;  %1746 = vmatprep.subr.mxu1 %v3000_v0 }
  0x34   :  { %708 = vmatpush2.msra.mxu0 %v192_v26  ;;  %1778 = vmatpush2.msra.mxu1 %v192_v26  ;;  %v34_v26 = vld [vmem:[%s2995_s1 + $0x70] sm:$0xff] }
  0x35   :  { %709 = vmatprep.subr.mxu0 %v3000_v0  ;;  %1747 = vmatprep.subr.mxu1 %v3000_v0 }
  0x36   :  { %710 = vmatpush2.msra.mxu0 %v191_v27  ;;  %1779 = vmatpush2.msra.mxu1 %v191_v27  ;;  %v231_v27 = vld [vmem:[%s2996_s2 + $0xc8] sm:$0xff] }
  0x37   :  { %711 = vmatprep.subr.mxu0 %v3000_v0  ;;  %1748 = vmatprep.subr.mxu1 %v3000_v0 }
  0x38   :  { %712 = vmatpush2.msra.mxu0 %v190_v28  ;;  %1780 = vmatpush2.msra.mxu1 %v190_v28  ;;  %v213_v28 = vld [vmem:[%s2996_s2 + $0x38] sm:$0xff] }
  0x39   :  { %713 = vmatprep.subr.mxu0 %v3000_v0  ;;  %1749 = vmatprep.subr.mxu1 %v3000_v0 }
  0x3a   :  { %714 = vmatpush2.msra.mxu0 %v189_v29  ;;  %1781 = vmatpush2.msra.mxu1 %v189_v29  ;;  %v47_v29 = vld [vmem:[%s2995_s1 + $0xd8] sm:$0xff] }
  0x3b   :  { %715 = vmatprep.subr.mxu0 %v3000_v0  ;;  %1750 = vmatprep.subr.mxu1 %v3000_v0 }
  0x3c   :  { %716 = vmatpush2.msra.mxu0 %v188_v30  ;;  %1782 = vmatpush2.msra.mxu1 %v188_v30  ;;  %v37_v30 = vld [vmem:[%s2995_s1 + $0x88] sm:$0xff] }
  0x3d   :  { %717 = vmatprep.subr.mxu0 %v3000_v0  ;;  %1751 = vmatprep.subr.mxu1 %v3000_v0 }
  0x3e   :  { %718 = vmatpush2.msra.mxu0 %v187_v31  ;;  %1783 = vmatpush2.msra.mxu1 %v187_v31  ;;  %v51_v31 = vld [vmem:[%s2995_s1 + $0xf8] sm:$0xff] }
  0x3f   :  { %719 = vmatprep.subr.mxu0 %v3000_v0  ;;  %1752 = vmatprep.subr.mxu1 %v3000_v0 }
  0x40   :  { %720 = vmatpush2.msra.mxu0 %v186_v32  ;;  %1784 = vmatpush2.msra.mxu1 %v186_v32  ;;  %v40_v32 = vld [vmem:[%s2995_s1 + $0xa0] sm:$0xff] }
  0x41   :  { %721 = vmatprep.mubr.f32.mxu0 %v21_v33  ;;  %936 = vmatprep.mubr.f32.mxu1 %v150_v34  ;;  %v230_v33 = vld [vmem:[%s2996_s2 + $0xc0] sm:$0xff]  ;;  %v212_v34 = vld [vmem:[%s2996_s2 + $0x30] sm:$0xff] }
  0x42   :  { %722 = vmatmul.mubr.f32.vlgmr.msra.gmra.mxu0 %v20_v35  ;;  %937 = vmatmul.mubr.f32.vlgmr.msra.gmra.mxu1 %v149_v36  ;;  %v50_v35 = vld [vmem:[%s2995_s1 + $0xf0] sm:$0xff]  ;;  %v43_v36 = vld [vmem:[%s2995_s1 + $0xb8] sm:$0xff] }
  0x43   :  { %726 = vmatprep.mubr.f32.mxu0 %v24_v37  ;;  %941 = vmatprep.mubr.f32.mxu1 %v153_v38  ;;  %v54_v37 = vld [vmem:[%s2995_s1 + $0x110] sm:$0xff] }
  0x44   :  { %1788 = vset.pattern.permute.xlu1 %v1792_v45  ;;  %1638 = vmatprep.subr.mxu1 %v205_v39  ;;  %v46_v38 = vld [vmem:[%s2995_s1 + $0xd0] sm:$0xff] }
  0x45   :  { %408 = vperm.xlu1 %1788, %v236_v40   ;;  %1639 = vmatpush3.msra.mxu1 %v205_v39  ;;  %v229_v39 = vld [vmem:[%s2996_s2 + $0xb8] sm:$0xff]  ;;  %v211_v40 = vld [vmem:[%s2996_s2 + $0x28] sm:$0xff] }
  0x46   :  { %727 = vmatmul.mubr.f32.gmra.mxu0 %v23_v41  ;;  %942 = vmatmul.mubr.f32.gmra.mxu1 %v152_v42  ;;  %v53_v41 = vld [vmem:[%s2995_s1 + $0x108] sm:$0xff] }
  0x47   :  { %731 = vmatprep.mubr.f32.mxu0 %v27_v43  ;;  %946 = vmatprep.mubr.f32.mxu1 %v156_v44  ;;  %v49_v42 = vld [vmem:[%s2995_s1 + $0xe8] sm:$0xff]  ;;  %v52_v44 = vld [vmem:[%s2995_s1 + $0x100] sm:$0xff] }
  0x48   :  { %1640 = vmatprep.subr.mxu1 %v204_v46  ;;  %1787 = vset.pattern.permute.xlu0 %v1792_v45  ;;  %v57_v43 = vld [vmem:[%s2995_s1 + $0x128] sm:$0xff]  ;;  %v228_v45 = vld [vmem:[%s2996_s2 + $0xb0] sm:$0xff] }
  0x49   :  { %328 = vperm.xlu1 %1788, %v220_v47   ;;  %1641 = vmatpush3.msra.mxu1 %v204_v46  ;;  %v210_v46 = vld [vmem:[%s2996_s2 + $0x20] sm:$0xff] }
  0x4a   :  { %732 = vmatmul.mubr.f32.gmra.mxu0 %v26_v48  ;;  %947 = vmatmul.mubr.f32.gmra.mxu1 %v155_v49  ;;  %v56_v47 = vld [vmem:[%s2995_s1 + $0x120] sm:$0xff]  ;;  %v55_v48 = vld [vmem:[%s2995_s1 + $0x118] sm:$0xff] }
  0x4b   :  { %736 = vmatprep.mubr.f32.mxu0 %v30_v50  ;;  %951 = vmatprep.mubr.f32.mxu1 %v159_v51  ;;  %v60_v49 = vld [vmem:[%s2995_s1 + $0x140] sm:$0xff]  ;;  %v58_v50 = vld [vmem:[%s2995_s1 + $0x130] sm:$0xff]  ;;  %v227_v51 = vld [vmem:[%s2996_s2 + $0xa8] sm:$0xff] }
  0x4c   :  { %1642 = vmatprep.subr.mxu1 %v203_v52  ;;  %413 = vperm.xlu0 %1787, %v237_v53   ;;  %v59_v53 = vld [vmem:[%s2995_s1 + $0x138] sm:$0xff] }
  0x4d   :  { %323 = vperm.xlu1 %1788, %v219_v54   ;;  %1643 = vmatpush3.msra.mxu1 %v203_v52  ;;  %v209_v52 = vld [vmem:[%s2996_s2 + $0x18] sm:$0xff]  ;;  %v61_v54 = vld [vmem:[%s2995_s1 + $0x148] sm:$0xff] }
  0x4e   :  { %737 = vmatmul.mubr.f32.gmra.mxu0 %v29_v55  ;;  %952 = vmatmul.mubr.f32.gmra.mxu1 %v158_v56  ;;  %v63_v55 = vld [vmem:[%s2995_s1 + $0x158] sm:$0xff]  ;;  %v64_v56 = vld [vmem:[%s2995_s1 + $0x160] sm:$0xff] }
  0x4f   :  { %741 = vmatprep.mubr.f32.mxu0 %v33_v57  ;;  %956 = vmatprep.mubr.f32.mxu1 %v162_v58  ;;  %v226_v57 = vld [vmem:[%s2996_s2 + $0xa0] sm:$0xff]  ;;  %v208_v58 = vld [vmem:[%s2996_s2 + $0x10] sm:$0xff] }
  0x50   :  { %1644 = vmatprep.subr.mxu1 %v202_v59  ;;  %333 = vperm.xlu0 %1787, %v221_v60   ;;  %v67_v60 = vld [vmem:[%s2995_s1 + $0x178] sm:$0xff] }
  0x51   :  { %318 = vperm.xlu1 %1788, %v218_v61   ;;  %1645 = vmatpush3.msra.mxu1 %v202_v59  ;;  %v62_v59 = vld [vmem:[%s2995_s1 + $0x150] sm:$0xff] }
  0x52   :  { %742 = vmatmul.mubr.f32.gmra.mxu0 %v32_v62  ;;  %957 = vmatmul.mubr.f32.gmra.mxu1 %v161_v63  ;;  %v66_v61 = vld [vmem:[%s2995_s1 + $0x170] sm:$0xff]  ;;  %v225_v63 = vld [vmem:[%s2996_s2 + $0x98] sm:$0xff] }
  0x53   :  { %746 = vmatprep.mubr.f32.mxu0 %v36_v1  ;;  %961 = vmatprep.mubr.f32.mxu1 %v165_v2  ;;  %v70_v62 = vld [vmem:[%s2995_s1 + $0x190] sm:$0xff]  ;;  %v207_v1 = vld [vmem:[%s2996_s2 + $0x8] sm:$0xff] }
  0x54   :  { %403 = vperm.xlu0 %1787, %v235_v3   ;;  %v65_v2 = vld [vmem:[%s2995_s1 + $0x168] sm:$0xff] }
  0x55   :  { %313 = vperm.xlu1 %1788, %v217_v4   ;;  %v73_v3 = vld [vmem:[%s2995_s1 + $0x1a8] sm:$0xff] }
  0x56   :  { %747 = vmatmul.mubr.f32.gmra.mxu0 %v35_v5  ;;  %962 = vmatmul.mubr.f32.gmra.mxu1 %v164_v6  ;;  %v69_v4 = vld [vmem:[%s2995_s1 + $0x188] sm:$0xff]  ;;  %v76_v5 = vld [vmem:[%s2995_s1 + $0x1c0] sm:$0xff]  ;;  %v224_v6 = vld [vmem:[%s2996_s2 + $0x90] sm:$0xff] }
  0x57   :  { %751 = vmatprep.mubr.f32.mxu0 %v39_v7  ;;  %966 = vmatprep.mubr.f32.mxu1 %v168_v8  ;;  %v206_v7 = vld [vmem:[%s2996_s2] sm:$0xff] }
  0x58   :  { %398 = vperm.xlu0 %1787, %v234_v9   ;;  %v68_v8 = vld [vmem:[%s2995_s1 + $0x180] sm:$0xff]  ;;  %v79_v9 = vld [vmem:[%s2995_s1 + $0x1d8] sm:$0xff] }
  0x59   :  { %308 = vperm.xlu1 %1788, %v216_v10   ;;  %v72_v10 = vld [vmem:[%s2995_s1 + $0x1a0] sm:$0xff] }
  0x5a   :  { %752 = vmatmul.mubr.f32.gmra.mxu0 %v38_v11  ;;  %967 = vmatmul.mubr.f32.gmra.mxu1 %v167_v12  ;;  %v82_v11 = vld [vmem:[%s2995_s1 + $0x1f0] sm:$0xff]  ;;  %v223_v12 = vld [vmem:[%s2996_s2 + $0x88] sm:$0xff] }
  0x5b   :  { %756 = vmatprep.mubr.f32.mxu0 %v42_v13  ;;  %1646 = vmatprep.mubr.msk.f32.mxu1 %vm506_vm0, %v22_v14  ;;  %v252_v13 = vld [vmem:[%s2996_s2 + $0x170] sm:$0xff]  ;;  %v71_v14 = vld [vmem:[%s2995_s1 + $0x198] sm:$0xff] }
  0x5c   :  { %393 = vperm.xlu0 %1787, %v233_v15   ;;  %v85_v15 = vld [vmem:[%s2995_s1 + $0x208] sm:$0xff] }
  0x5d   :  { %303 = vperm.xlu1 %1788, %v215_v16   ;;  %v75_v16 = vld [vmem:[%s2995_s1 + $0x1b8] sm:$0xff] }
  0x5e   :  { %757 = vmatmul.mubr.f32.gmra.mxu0 %v41_v17  ;;  %1647 = vmatmul.mubr.msk.f32.vlgmr.msra.gmra.mxu1 %vm506_vm0, %v25_v18  ;;  %v88_v17 = vld [vmem:[%s2995_s1 + $0x220] sm:$0xff] }
  0x5f   :  { %761 = vmatprep.mubr.f32.mxu0 %v45_v19  ;;  %1649 = vmatprep.mubr.msk.f32.mxu1 %vm506_vm0, %v28_v20  ;;  %v222_v18 = vld [vmem:[%s2996_s2 + $0x80] sm:$0xff]  ;;  %v74_v20 = vld [vmem:[%s2995_s1 + $0x1b0] sm:$0xff] }
  0x60   :  { %388 = vperm.xlu0 %1787, %v232_v21   ;;  %v250_v19 = vld [vmem:[%s2996_s2 + $0x160] sm:$0xff]  ;;  %v91_v21 = vld [vmem:[%s2995_s1 + $0x238] sm:$0xff] }
  0x61   :  { %298 = vperm.xlu1 %1788, %v214_v22   ;;  %v78_v22 = vld [vmem:[%s2995_s1 + $0x1d0] sm:$0xff] }
  0x62   :  { %762 = vmatmul.mubr.f32.gmra.mxu0 %v44_v23  ;;  %1650 = vmatmul.mubr.msk.f32.gmra.mxu1 %vm506_vm0, %v31_v24  ;;  %v94_v23 = vld [vmem:[%s2995_s1 + $0x250] sm:$0xff]  ;;  %v253_v24 = vld [vmem:[%s2996_s2 + $0x178] sm:$0xff] }
  0x63   :  { %766 = vmatprep.mubr.f32.mxu0 %v48_v25  ;;  %1652 = vmatprep.mubr.msk.f32.mxu1 %vm506_vm0, %v34_v26  ;;  %v248_v25 = vld [vmem:[%s2996_s2 + $0x150] sm:$0xff]  ;;  %v77_v26 = vld [vmem:[%s2995_s1 + $0x1c8] sm:$0xff] }
  0x64   :  { %383 = vperm.xlu0 %1787, %v231_v27   ;;  %v97_v27 = vld [vmem:[%s2995_s1 + $0x268] sm:$0xff] }
  0x65   :  { %293 = vperm.xlu1 %1788, %v213_v28   ;;  %v81_v28 = vld [vmem:[%s2995_s1 + $0x1e8] sm:$0xff] }
  0x66   :  { %767 = vmatmul.mubr.f32.gmra.mxu0 %v47_v29  ;;  %1653 = vmatmul.mubr.msk.f32.gmra.mxu1 %vm506_vm0, %v37_v30  ;;  %v100_v29 = vld [vmem:[%s2995_s1 + $0x280] sm:$0xff]  ;;  %v251_v30 = vld [vmem:[%s2996_s2 + $0x168] sm:$0xff] }
  0x67   :  { %771 = vmatprep.mubr.f32.mxu0 %v51_v31  ;;  %1655 = vmatprep.mubr.msk.f32.mxu1 %vm506_vm0, %v40_v32  ;;  %v246_v31 = vld [vmem:[%s2996_s2 + $0x140] sm:$0xff] }
  0x68   :  { %378 = vperm.xlu0 %1787, %v230_v33   ;;  %v80_v32 = vld [vmem:[%s2995_s1 + $0x1e0] sm:$0xff]  ;;  %v103_v33 = vld [vmem:[%s2995_s1 + $0x298] sm:$0xff] }
  0x69   :  { %288 = vperm.xlu1 %1788, %v212_v34   ;;  %v84_v34 = vld [vmem:[%s2995_s1 + $0x200] sm:$0xff] }
  0x6a   :  { %772 = vmatmul.mubr.f32.gmra.mxu0 %v50_v35  ;;  %1656 = vmatmul.mubr.msk.f32.gmra.mxu1 %vm506_vm0, %v43_v36  ;;  %v106_v35 = vld [vmem:[%s2995_s1 + $0x2b0] sm:$0xff]  ;;  %v249_v36 = vld [vmem:[%s2996_s2 + $0x158] sm:$0xff] }
  0x6b   :  { %776 = vmatprep.mubr.f32.mxu0 %v54_v37  ;;  %1658 = vmatprep.mubr.msk.f32.mxu1 %vm506_vm0, %v46_v38  ;;  %v244_v37 = vld [vmem:[%s2996_s2 + $0x130] sm:$0xff]  ;;  %v83_v38 = vld [vmem:[%s2995_s1 + $0x1f8] sm:$0xff] }
  0x6c   :  { %373 = vperm.xlu0 %1787, %v229_v39   ;;  %v109_v39 = vld [vmem:[%s2995_s1 + $0x2c8] sm:$0xff] }
  0x6d   :  { %283 = vperm.xlu1 %1788, %v211_v40   ;;  %v87_v40 = vld [vmem:[%s2995_s1 + $0x218] sm:$0xff] }
  0x6e   :  { %777 = vmatmul.mubr.f32.gmra.mxu0 %v53_v41  ;;  %1659 = vmatmul.mubr.msk.f32.gmra.mxu1 %vm506_vm0, %v49_v42  ;;  %v112_v41 = vld [vmem:[%s2995_s1 + $0x2e0] sm:$0xff]  ;;  %v247_v42 = vld [vmem:[%s2996_s2 + $0x148] sm:$0xff] }
  0x6f   :  { %781 = vmatprep.mubr.f32.mxu0 %v57_v43  ;;  %1661 = vmatprep.mubr.msk.f32.mxu1 %vm506_vm0, %v52_v44  ;;  %v242_v43 = vld [vmem:[%s2996_s2 + $0x120] sm:$0xff]  ;;  %v86_v44 = vld [vmem:[%s2995_s1 + $0x210] sm:$0xff] }
  0x70   :  { %368 = vperm.xlu0 %1787, %v228_v45   ;;  %v115_v45 = vld [vmem:[%s2995_s1 + $0x2f8] sm:$0xff] }
  0x71   :  { %278 = vperm.xlu1 %1788, %v210_v46   ;;  %v90_v46 = vld [vmem:[%s2995_s1 + $0x230] sm:$0xff] }
  0x72   :  { %782 = vmatmul.mubr.f32.gmra.mxu0 %v56_v47  ;;  %1662 = vmatmul.mubr.msk.f32.gmra.mxu1 %vm506_vm0, %v55_v48  ;;  %v118_v47 = vld [vmem:[%s2995_s1 + $0x310] sm:$0xff]  ;;  %v245_v48 = vld [vmem:[%s2996_s2 + $0x138] sm:$0xff] }
  0x73   :  { %786 = vmatprep.mubr.f32.mxu0 %v60_v49  ;;  %1664 = vmatprep.mubr.msk.f32.mxu1 %vm506_vm0, %v58_v50  ;;  %v240_v49 = vld [vmem:[%s2996_s2 + $0x110] sm:$0xff]  ;;  %v89_v50 = vld [vmem:[%s2995_s1 + $0x228] sm:$0xff] }
  0x74   :  { %363 = vperm.xlu0 %1787, %v227_v51   ;;  %v121_v51 = vld [vmem:[%s2995_s1 + $0x328] sm:$0xff] }
  0x75   :  { %273 = vperm.xlu1 %1788, %v209_v52   ;;  %v93_v52 = vld [vmem:[%s2995_s1 + $0x248] sm:$0xff] }
  0x76   :  { %787 = vmatmul.mubr.f32.gmra.mxu0 %v59_v53  ;;  %1665 = vmatmul.mubr.msk.f32.gmra.mxu1 %vm506_vm0, %v61_v54  ;;  %v124_v53 = vld [vmem:[%s2995_s1 + $0x340] sm:$0xff]  ;;  %v243_v54 = vld [vmem:[%s2996_s2 + $0x128] sm:$0xff] }
  0x77   :  { %791 = vmatprep.mubr.f32.mxu0 %v63_v55  ;;  %1667 = vmatprep.mubr.msk.f32.mxu1 %vm506_vm0, %v64_v56  ;;  %v238_v55 = vld [vmem:[%s2996_s2 + $0x100] sm:$0xff] }
  0x78   :  { %358 = vperm.xlu0 %1787, %v226_v57   ;;  %v92_v56 = vld [vmem:[%s2995_s1 + $0x240] sm:$0xff]  ;;  %v127_v57 = vld [vmem:[%s2995_s1 + $0x358] sm:$0xff] }
  0x79   :  { %268 = vperm.xlu1 %1788, %v208_v58   ;;  %v96_v58 = vld [vmem:[%s2995_s1 + $0x260] sm:$0xff] }
  0x7a   :  { %792 = vmatmul.mubr.f32.gmra.mxu0 %v62_v59  ;;  %1668 = vmatmul.mubr.msk.f32.gmra.mxu1 %vm506_vm0, %v67_v60  ;;  %v130_v59 = vld [vmem:[%s2995_s1 + $0x370] sm:$0xff]  ;;  %v241_v60 = vld [vmem:[%s2996_s2 + $0x118] sm:$0xff] }
  0x7b   :  { %796 = vmatprep.mubr.f32.mxu0 %v66_v61  ;;  %1670 = vmatprep.mubr.msk.f32.mxu1 %vm506_vm0, %v70_v62  ;;  %v254_v61 = vld [vmem:[%s2996_s2 + $0x180] sm:$0xff]  ;;  %v95_v62 = vld [vmem:[%s2995_s1 + $0x258] sm:$0xff] }
  0x7c   :  { %353 = vperm.xlu0 %1787, %v225_v63   ;;  %v133_v63 = vld [vmem:[%s2995_s1 + $0x388] sm:$0xff] }
  0x7d   :  { %263 = vperm.xlu1 %1788, %v207_v1   ;;  %v99_v1 = vld [vmem:[%s2995_s1 + $0x278] sm:$0xff] }
  0x7e   :  { %797 = vmatmul.mubr.f32.gmra.mxu0 %v65_v2  ;;  %1671 = vmatmul.mubr.msk.f32.gmra.mxu1 %vm506_vm0, %v73_v3  ;;  %v136_v2 = vld [vmem:[%s2995_s1 + $0x3a0] sm:$0xff]  ;;  %v239_v3 = vld [vmem:[%s2996_s2 + $0x108] sm:$0xff] }
  0x7f   :  { %801 = vmatprep.mubr.f32.mxu0 %v69_v4  ;;  %1673 = vmatprep.mubr.msk.f32.mxu1 %vm506_vm0, %v76_v5  ;;  %v98_v4 = vld [vmem:[%s2995_s1 + $0x270] sm:$0xff]  ;;  %v139_v5 = vld [vmem:[%s2995_s1 + $0x3b8] sm:$0xff] }
  0x80   :  { %348 = vperm.xlu0 %1787, %v224_v6   ;;  %v102_v6 = vld [vmem:[%s2995_s1 + $0x290] sm:$0xff] }
  0x81   :  { %258 = vperm.xlu1 %1788, %v206_v7   ;;  %v142_v7 = vld [vmem:[%s2995_s1 + $0x3d0] sm:$0xff] }
  0x82   :  { %802 = vmatmul.mubr.f32.gmra.mxu0 %v68_v8  ;;  %1674 = vmatmul.mubr.msk.f32.gmra.mxu1 %vm506_vm0, %v79_v9  ;;  %v255_v8 = vld [vmem:[%s2996_s2 + $0x188] sm:$0xff] }
  0x83   :  { %806 = vmatprep.mubr.f32.mxu0 %v72_v10  ;;  %1676 = vmatprep.mubr.msk.f32.mxu1 %vm506_vm0, %v82_v11  ;;  %v101_v9 = vld [vmem:[%s2995_s1 + $0x288] sm:$0xff] }
  0x84   :  { %343 = vperm.xlu0 %1787, %v223_v12   ;;  %v145_v10 = vld [vmem:[%s2995_s1 + $0x3e8] sm:$0xff]  ;;  %v148_v12 = vld [vmem:[%s2995_s1 + $0x400] sm:$0xff] }
  0x85   :  { %488 = vperm.xlu1 %1788, %v252_v13   ;;  %v105_v11 = vld [vmem:[%s2995_s1 + $0x2a8] sm:$0xff]  ;;  %v1339_v13 = vld [vmem:[%s2997_s4] sm:$0x7] }
  0x86   :  { %807 = vmatmul.mubr.f32.gmra.mxu0 %v71_v14  ;;  %1677 = vmatmul.mubr.msk.f32.gmra.mxu1 %vm506_vm0, %v85_v15  ;;  %v104_v14 = vld [vmem:[%s2995_s1 + $0x2a0] sm:$0xff]  ;;  %v151_v15 = vld [vmem:[%s2995_s1 + $0x418] sm:$0xff] }
  0x87   :  { %811 = vmatprep.mubr.f32.mxu0 %v75_v16  ;;  %1679 = vmatprep.mubr.msk.f32.mxu1 %vm506_vm0, %v88_v17  ;;  %v108_v16 = vld [vmem:[%s2995_s1 + $0x2c0] sm:$0xff]  ;;  %v154_v17 = vld [vmem:[%s2995_s1 + $0x430] sm:$0xff] }
  0x88   :  { %338 = vperm.xlu0 %1787, %v222_v18   ;;  %v107_v18 = vld [vmem:[%s2995_s1 + $0x2b8] sm:$0xff] }
  0x89   :  { %478 = vperm.xlu1 %1788, %v250_v19   ;;  %v157_v19 = vld [vmem:[%s2995_s1 + $0x448] sm:$0xff] }
  0x8a   :  { %812 = vmatmul.mubr.f32.gmra.mxu0 %v74_v20  ;;  %1680 = vmatmul.mubr.msk.f32.gmra.mxu1 %vm506_vm0, %v91_v21  ;;  %v111_v20 = vld [vmem:[%s2995_s1 + $0x2d8] sm:$0xff]  ;;  %v160_v21 = vld [vmem:[%s2995_s1 + $0x460] sm:$0xff] }
  0x8b   :  { %816 = vmatprep.mubr.f32.mxu0 %v78_v22  ;;  %1682 = vmatprep.mubr.msk.f32.mxu1 %vm506_vm0, %v94_v23  ;;  %v110_v22 = vld [vmem:[%s2995_s1 + $0x2d0] sm:$0xff]  ;;  %v163_v23 = vld [vmem:[%s2995_s1 + $0x478] sm:$0xff] }
  0x8c   :  { %493 = vperm.xlu0 %1787, %v253_v24   ;;  %v114_v24 = vld [vmem:[%s2995_s1 + $0x2f0] sm:$0xff] }
  0x8d   :  { %468 = vperm.xlu1 %1788, %v248_v25   ;;  %v166_v25 = vld [vmem:[%s2995_s1 + $0x490] sm:$0xff] }
  0x8e   :  { %817 = vmatmul.mubr.f32.gmra.mxu0 %v77_v26  ;;  %1683 = vmatmul.mubr.msk.f32.gmra.mxu1 %vm506_vm0, %v97_v27  ;;  %v113_v26 = vld [vmem:[%s2995_s1 + $0x2e8] sm:$0xff] }
  0x8f   :  { %821 = vmatprep.mubr.f32.mxu0 %v81_v28  ;;  %1685 = vmatprep.mubr.msk.f32.mxu1 %vm506_vm0, %v100_v29  ;;  %v169_v27 = vld [vmem:[%s2995_s1 + $0x4a8] sm:$0xff]  ;;  %v116_v29 = vld [vmem:[%s2995_s1 + $0x300] sm:$0xff] }
  0x90   :  { %483 = vperm.xlu0 %1787, %v251_v30   ;;  %v117_v28 = vld [vmem:[%s2995_s1 + $0x308] sm:$0xff]  ;;  %v120_v30 = vld [vmem:[%s2995_s1 + $0x320] sm:$0xff] }
  0x91   :  { %458 = vperm.xlu1 %1788, %v246_v31  }
  0x92   :  { %822 = vmatmul.mubr.f32.gmra.mxu0 %v80_v32  ;;  %1686 = vmatmul.mubr.msk.f32.gmra.mxu1 %vm506_vm0, %v103_v33  ;;  %v119_v32 = vld [vmem:[%s2995_s1 + $0x318] sm:$0xff] }
  0x93   :  { %826 = vmatprep.mubr.f32.mxu0 %v84_v34  ;;  %1688 = vmatprep.mubr.msk.f32.mxu1 %vm506_vm0, %v106_v35  ;;  %v123_v33 = vld [vmem:[%s2995_s1 + $0x338] sm:$0xff]  ;;  %v122_v35 = vld [vmem:[%s2995_s1 + $0x330] sm:$0xff] }
  0x94   :  { %473 = vperm.xlu0 %1787, %v249_v36   ;;  %v126_v36 = vld [vmem:[%s2995_s1 + $0x350] sm:$0xff] }
  0x95   :  { %448 = vperm.xlu1 %1788, %v244_v37   ;;  %v125_v37 = vld [vmem:[%s2995_s1 + $0x348] sm:$0xff] }
  0x96   :  { %827 = vmatmul.mubr.f32.gmra.mxu0 %v83_v38  ;;  %1689 = vmatmul.mubr.msk.f32.gmra.mxu1 %vm506_vm0, %v109_v39  ;;  %v129_v38 = vld [vmem:[%s2995_s1 + $0x368] sm:$0xff] }
  0x97   :  { %831 = vmatprep.mubr.f32.mxu0 %v87_v40  ;;  %1691 = vmatprep.mubr.msk.f32.mxu1 %vm506_vm0, %v112_v41  ;;  %v128_v40 = vld [vmem:[%s2995_s1 + $0x360] sm:$0xff] }
  0x98   :  { %463 = vperm.xlu0 %1787, %v247_v42   ;;  %v132_v41 = vld [vmem:[%s2995_s1 + $0x380] sm:$0xff] }
  0x99   :  { %438 = vperm.xlu1 %1788, %v242_v43   ;;  %v131_v43 = vld [vmem:[%s2995_s1 + $0x378] sm:$0xff] }
  0x9a   :  { %832 = vmatmul.mubr.f32.gmra.mxu0 %v86_v44  ;;  %1692 = vmatmul.mubr.msk.f32.gmra.mxu1 %vm506_vm0, %v115_v45  ;;  %v135_v44 = vld [vmem:[%s2995_s1 + $0x398] sm:$0xff]  ;;  %v134_v45 = vld [vmem:[%s2995_s1 + $0x390] sm:$0xff] }
  0x9b   :  { %836 = vmatprep.mubr.f32.mxu0 %v90_v46  ;;  %1694 = vmatprep.mubr.msk.f32.mxu1 %vm506_vm0, %v118_v47  ;;  %v138_v46 = vld [vmem:[%s2995_s1 + $0x3b0] sm:$0xff] }
  0x9c   :  { %453 = vperm.xlu0 %1787, %v245_v48   ;;  %v137_v48 = vld [vmem:[%s2995_s1 + $0x3a8] sm:$0xff] }
  0x9d   :  { %428 = vperm.xlu1 %1788, %v240_v49   ;;  %v141_v49 = vld [vmem:[%s2995_s1 + $0x3c8] sm:$0xff] }
  0x9e   :  { %837 = vmatmul.mubr.f32.gmra.mxu0 %v89_v50  ;;  %1695 = vmatmul.mubr.msk.f32.gmra.mxu1 %vm506_vm0, %v121_v51  ;;  %v140_v51 = vld [vmem:[%s2995_s1 + $0x3c0] sm:$0xff] }
  0x9f   :  { %841 = vmatprep.mubr.f32.mxu0 %v93_v52  ;;  %1697 = vmatprep.mubr.msk.f32.mxu1 %vm506_vm0, %v124_v53  ;;  %v144_v52 = vld [vmem:[%s2995_s1 + $0x3e0] sm:$0xff]  ;;  %v143_v53 = vld [vmem:[%s2995_s1 + $0x3d8] sm:$0xff] }
  0xa0   :  { %443 = vperm.xlu0 %1787, %v243_v54   ;;  %v147_v54 = vld [vmem:[%s2995_s1 + $0x3f8] sm:$0xff] }
  0xa1   :  { %418 = vperm.xlu1 %1788, %v238_v55  }
  0xa2   :  { %842 = vmatmul.mubr.f32.gmra.mxu0 %v92_v56  ;;  %1698 = vmatmul.mubr.msk.f32.gmra.mxu1 %vm506_vm0, %v127_v57  ;;  %v146_v56 = vld [vmem:[%s2995_s1 + $0x3f0] sm:$0xff] }
  0xa3   :  { %846 = vmatprep.mubr.f32.mxu0 %v96_v58  ;;  %1700 = vmatprep.mubr.msk.f32.mxu1 %vm506_vm0, %v130_v59 }
  0xa4   :  { %433 = vperm.xlu0 %1787, %v241_v60  }
  0xa5   :  { %498 = vperm.xlu1 %1788, %v254_v61  }
  0xa6   :  { %847 = vmatmul.mubr.f32.gmra.mxu0 %v95_v62  ;;  %1701 = vmatmul.mubr.msk.f32.gmra.mxu1 %vm506_vm0, %v133_v63 }
  0xa7   :  { %851 = vmatprep.mubr.f32.mxu0 %v99_v1  ;;  %1703 = vmatprep.mubr.msk.f32.mxu1 %vm506_vm0, %v136_v2 }
  0xa8   :  { %423 = vperm.xlu0 %1787, %v239_v3  }
  0xaa   :  { %852 = vmatmul.mubr.f32.gmra.mxu0 %v98_v4  ;;  %1704 = vmatmul.mubr.msk.f32.gmra.mxu1 %vm506_vm0, %v139_v5 }
  0xab   :  { %856 = vmatprep.mubr.f32.mxu0 %v102_v6  ;;  %1706 = vmatprep.mubr.msk.f32.mxu1 %vm506_vm0, %v142_v7 }
  0xac   :  { %503 = vperm.xlu0 %1787, %v255_v8  }
  0xae   :  { %857 = vmatmul.mubr.f32.gmra.mxu0 %v101_v9  ;;  %1707 = vmatmul.mubr.msk.f32.gmra.mxu1 %vm506_vm0, %v145_v10 }
  0xaf   :  { %861 = vmatprep.mubr.f32.mxu0 %v105_v11  ;;  %1709 = vmatprep.mubr.msk.f32.mxu1 %vm506_vm0, %v148_v12 }
  0xb0   :  { %1342 = vperm.xlu0 %1787, %v1339_v13  }
  0xb2   :  { %862 = vmatmul.mubr.f32.gmra.mxu0 %v104_v14  ;;  %1710 = vmatmul.mubr.msk.f32.gmra.mxu1 %vm506_vm0, %v151_v15 }
  0xb3   :  { %866 = vmatprep.mubr.f32.mxu0 %v108_v16  ;;  %1712 = vmatprep.mubr.msk.f32.mxu1 %vm506_vm0, %v154_v17 }
  0xb6   :  { %867 = vmatmul.mubr.f32.gmra.mxu0 %v107_v18  ;;  %1713 = vmatmul.mubr.msk.f32.gmra.mxu1 %vm506_vm0, %v157_v19 }
  0xb7   :  { %871 = vmatprep.mubr.f32.mxu0 %v111_v20  ;;  %1715 = vmatprep.mubr.msk.f32.mxu1 %vm506_vm0, %v160_v21 }
  0xba   :  { %872 = vmatmul.mubr.f32.gmra.mxu0 %v110_v22  ;;  %1716 = vmatmul.mubr.msk.f32.gmra.mxu1 %vm506_vm0, %v163_v23 }
  0xbb   :  { %876 = vmatprep.mubr.f32.mxu0 %v114_v24  ;;  %1718 = vmatprep.mubr.msk.f32.mxu1 %vm506_vm0, %v166_v25 }
  0xbe   :  { %877 = vmatmul.mubr.f32.gmra.mxu0 %v113_v26  ;;  %1719 = vmatmul.mubr.msk.f32.gmra.mxu1 %vm506_vm0, %v169_v27 }
  0xbf   :  { %881 = vmatprep.mubr.f32.mxu0 %v117_v28 }
  0xc0   :  { %v2591_v31 = vpop.permute.xlu1 %408 }
  0xc2   :  { %882 = vmatmul.mubr.f32.gmra.mxu0 %v116_v29 }
  0xc3   :  { %886 = vmatprep.mubr.f32.mxu0 %v120_v30 }
  0xc4   :  { %v2599_v34 = vpop.permute.xlu1 %328 }
  0xc6   :  { %887 = vmatmul.mubr.f32.gmra.mxu0 %v119_v32 }
  0xc7   :  { %891 = vmatprep.mubr.f32.mxu0 %v123_v33 }
  0xc8   :  { %v2613_v39 = vpop.permute.xlu1 %323 }
  0xca   :  { %892 = vmatmul.mubr.f32.gmra.mxu0 %v122_v35 }
  0xcb   :  { %896 = vmatprep.mubr.f32.mxu0 %v126_v36 }
  0xcc   :  { %v2621_v42 = vpop.permute.xlu1 %318 }
  0xce   :  { %897 = vmatmul.mubr.f32.gmra.mxu0 %v125_v37 }
  0xcf   :  { %901 = vmatprep.mubr.f32.mxu0 %v129_v38 }
  0xd0   :  { %v2635_v47 = vpop.permute.xlu1 %313 }
  0xd2   :  { %902 = vmatmul.mubr.f32.gmra.mxu0 %v128_v40 }
  0xd3   :  { %906 = vmatprep.mubr.f32.mxu0 %v132_v41 }
  0xd4   :  { %v2643_v50 = vpop.permute.xlu1 %308 }
  0xd6   :  { %907 = vmatmul.mubr.f32.gmra.mxu0 %v131_v43 }
  0xd7   :  { %911 = vmatprep.mubr.f32.mxu0 %v135_v44  ;;  %v2689_v44 = vld [vmem:[%s2998_s3] sm:$0x77] }
  0xd8   :  { %v2657_v55 = vpop.permute.xlu1 %303  ;;  %3012 = vst [vmem:[#allocation11_spill] sm:$0xff] %v2689_v44 }
  0xda   :  { %912 = vmatmul.mubr.f32.gmra.mxu0 %v134_v45 }
  0xdb   :  { %916 = vmatprep.mubr.f32.mxu0 %v138_v46 }
  0xdc   :  { %v2662_v57 = vpop.permute.xlu1 %298 }
  0xde   :  { %917 = vmatmul.mubr.f32.gmra.mxu0 %v137_v48  ;;  %v1347_v48 = vcombine.high %v2689_v44, %v2689_v44 }
  0xdf   :  { %921 = vmatprep.mubr.f32.mxu0 %v141_v49 }
  0xe0   :  { %v2664_v58 = vpop.permute.xlu1 %293  ;;  %1417 = vmatprep.mubr.f32.mxu1 %v1347_v48 }
  0xe2   :  { %922 = vmatmul.mubr.f32.gmra.mxu0 %v140_v51 }
  0xe3   :  { %926 = vmatprep.mubr.f32.mxu0 %v144_v52 }
  0xe4   :  { %v2666_v59 = vpop.permute.xlu1 %288 }
  0xe6   :  { %927 = vmatmul.mubr.f32.gmra.mxu0 %v143_v53 }
  0xe7   :  { %931 = vmatprep.mubr.f32.mxu0 %v147_v54 }
  0xe8   :  { %v284_v60 = vpop.permute.xlu1 %283 }
  0xea   :  { %932 = vmatmul.mubr.f32.gmra.mxu0 %v146_v56 }
  0xec   :  { %v279_v63 = vpop.permute.xlu1 %278 }
  0xf0   :  { %v274_v7 = vpop.permute.xlu1 %273 }
  0xf4   :  { %v269_v14 = vpop.permute.xlu1 %268 }
  0xf8   :  { %v264_v21 = vpop.permute.xlu1 %263 }
  0xfc   :  { %v259_v28 = vpop.permute.xlu1 %258 }
 0x102   :  { %v723_v61 = vpop.f32.mrf.mxu0  ;;  %v2668_v62 = vpop.f32.mrf.mxu1 }
 0x103   :  { %3003 = vst [vmem:[#allocation2_spill] sm:$0xff] %v2668_v62  ;;  %v724_v36 = vadd.f32 %v723_v61, %v259_v28 }
 0x104   :  { %v725_v1 = vpop.f32.mrf.mxu0  ;;  %v940_v2 = vpop.f32.mrf.mxu1 }
 0x106   :  { %v728_v3 = vpop.f32.mrf.mxu0  ;;  %v2670_v4 = vpop.f32.mrf.mxu1 }
 0x107   :  { %3004 = vst [vmem:[#allocation3_spill] sm:$0xff] %v2670_v4  ;;  %v729_v32 = vadd.f32 %v728_v3, %v264_v21 }
 0x108   :  { %v730_v5 = vpop.f32.mrf.mxu0  ;;  %v945_v6 = vpop.f32.mrf.mxu1 }
 0x10a   :  { %v733_v8 = vpop.f32.mrf.mxu0  ;;  %v2672_v9 = vpop.f32.mrf.mxu1 }
 0x10b   :  { %3005 = vst [vmem:[#allocation4_spill] sm:$0xff] %v2672_v9  ;;  %v734_v49 = vadd.f32 %v733_v8, %v269_v14 }
 0x10c   :  { %v735_v10 = vpop.f32.mrf.mxu0  ;;  %v950_v11 = vpop.f32.mrf.mxu1 }
 0x10e   :  { %v738_v12 = vpop.f32.mrf.mxu0  ;;  %v2674_v13 = vpop.f32.mrf.mxu1 }
 0x10f   :  { %3006 = vst [vmem:[#allocation5_spill] sm:$0xff] %v2674_v13  ;;  %v739_v41 = vadd.f32 %v738_v12, %v274_v7  ;;  %v2708_v12 = vpop.permute.xlu0 %413 }
 0x110   :  { %v740_v15 = vpop.f32.mrf.mxu0  ;;  %v955_v16 = vpop.f32.mrf.mxu1 }
 0x112   :  { %v743_v17 = vpop.f32.mrf.mxu0  ;;  %v2676_v18 = vpop.f32.mrf.mxu1 }
 0x113   :  { %3007 = vst [vmem:[#allocation6_spill] sm:$0xff] %v2676_v18  ;;  %v744_v2 = vadd.f32 %v743_v17, %v279_v63  ;;  %v2721_v21 = vpop.permute.xlu0 %333 }
 0x114   :  { %v745_v19 = vpop.f32.mrf.mxu0  ;;  %v960_v20 = vpop.f32.mrf.mxu1 }
 0x116   :  { %v748_v22 = vpop.f32.mrf.mxu0  ;;  %v2678_v23 = vpop.f32.mrf.mxu1 }
 0x117   :  { %3008 = vst [vmem:[#allocation7_spill] sm:$0xff] %v2678_v23  ;;  %v749_v54 = vadd.f32 %v748_v22, %v284_v60 }
 0x118   :  { %v750_v24 = vpop.f32.mrf.mxu0  ;;  %v965_v25 = vpop.f32.mrf.mxu1 }
 0x11a   :  { %v753_v26 = vpop.f32.mrf.mxu0  ;;  %v2680_v27 = vpop.f32.mrf.mxu1 }
 0x11b   :  { %3009 = vst [vmem:[#allocation8_spill] sm:$0xff] %v2680_v27  ;;  %v754_v60 = vadd.f32 %v753_v26, %v2666_v59 }
 0x11c   :  { %v755_v29 = vpop.f32.mrf.mxu0  ;;  %v970_v30 = vpop.f32.mrf.mxu1 }
 0x11d   :  { %v2733_v29 = vpop.permute.xlu0 %403 }
 0x11e   :  { %v758_v33 = vpop.f32.mrf.mxu0  ;;  %v1648_v35 = vpop.f32.mrf.mxu1 }
 0x11f   :  { %v2682_v37 = vadd.f32 %v1648_v35, %v729_v32  ;;  %v759_v7 = vadd.f32 %v758_v33, %v2664_v58 }
 0x120   :  { %v760_v38 = vpop.f32.mrf.mxu0  ;;  %v1038_v40 = vpop.f32.mrf.mxu1 }
 0x121   :  { %3010 = vst [vmem:[#allocation9_spill] sm:$0xff] %v2682_v37  ;;  %v2684_v43 = vadd.f32 %v1038_v40, %v724_v36  ;;  %v2743_v40 = vpop.permute.xlu0 %398 }
 0x122   :  { %v2691_v45 = vpop.f32.mrf.mxu0  ;;  %v1651_v46 = vpop.f32.mrf.mxu1 }
 0x123   :  { %3011 = vst [vmem:[#allocation10_spill] sm:$0xff] %v2684_v43  ;;  %v2695_v51 = vadd.f32 %v1651_v46, %v739_v41 }
 0x124   :  { %v765_v52 = vpop.f32.mrf.mxu0  ;;  %v1048_v53 = vpop.f32.mrf.mxu1 }
 0x125   :  { %3013 = vst [vmem:[#allocation12_spill] sm:$0xff] %v2695_v51  ;;  %v2697_v56 = vadd.f32 %v1048_v53, %v734_v49 }
 0x126   :  { %v2699_v61 = vpop.f32.mrf.mxu0  ;;  %v1654_v1 = vpop.f32.mrf.mxu1 }
 0x127   :  { %3014 = vst [vmem:[#allocation13_spill] sm:$0xff] %v2697_v56  ;;  %v2701_v3 = vadd.f32 %v1654_v1, %v749_v54  ;;  %v2755_v54 = vpop.permute.xlu0 %393 }
 0x128   :  { %v770_v5 = vpop.f32.mrf.mxu0  ;;  %v1058_v6 = vpop.f32.mrf.mxu1 }
 0x129   :  { %3015 = vst [vmem:[#allocation14_spill] sm:$0xff] %v2701_v3  ;;  %v2704_v10 = vadd.f32 %v1058_v6, %v744_v2 }
 0x12a   :  { %v2706_v8 = vpop.f32.mrf.mxu0  ;;  %v1657_v11 = vpop.f32.mrf.mxu1 }
 0x12b   :  { %3016 = vst [vmem:[#allocation15_spill] sm:$0xff] %v2704_v10  ;;  %v2711_v14 = vadd.f32 %v1657_v11, %v759_v7 }
 0x12c   :  { %v775_v15 = vpop.f32.mrf.mxu0  ;;  %v1068_v16 = vpop.f32.mrf.mxu1 }
 0x12d   :  { %3017 = vst [vmem:[#allocation16_spill] sm:$0xff] %v2711_v14  ;;  %v2713_v63 = vadd.f32 %v1068_v16, %v754_v60  ;;  %v2765_v60 = vpop.permute.xlu0 %388 }
 0x12e   :  { %v2715_v17 = vpop.f32.mrf.mxu0  ;;  %v2717_v19 = vpop.f32.mrf.mxu1 }
 0x12f   :  { %3018 = vst [vmem:[#allocation17_spill] sm:$0xff] %v2713_v63 }
 0x130   :  { %v780_v58 = vpop.f32.mrf.mxu0  ;;  %v2719_v20 = vpop.f32.mrf.mxu1 }
 0x132   :  { %v2723_v22 = vpop.f32.mrf.mxu0  ;;  %v2725_v24 = vpop.f32.mrf.mxu1 }
 0x134   :  { %v785_v59 = vpop.f32.mrf.mxu0  ;;  %v2727_v25 = vpop.f32.mrf.mxu1 }
 0x136   :  { %v2729_v26 = vpop.f32.mrf.mxu0  ;;  %v2731_v28 = vpop.f32.mrf.mxu1 }
 0x138   :  { %v790_v30 = vpop.f32.mrf.mxu0  ;;  %v2735_v32 = vpop.f32.mrf.mxu1 }
 0x13a   :  { %v2737_v33 = vpop.f32.mrf.mxu0  ;;  %v2739_v35 = vpop.f32.mrf.mxu1 }
 0x13c   :  { %v795_v36 = vpop.f32.mrf.mxu0  ;;  %v2741_v38 = vpop.f32.mrf.mxu1 }
 0x13e   :  { %v2745_v41 = vpop.f32.mrf.mxu0  ;;  %v2747_v46 = vpop.f32.mrf.mxu1 }
 0x13f   :  { %3019 = vst [vmem:[#allocation18_spill] sm:$0xff] %v2747_v46 }
 0x140   :  { %v800_v48 = vpop.f32.mrf.mxu0  ;;  %v2749_v49 = vpop.f32.mrf.mxu1 }
 0x141   :  { %3020 = vst [vmem:[#allocation19_spill] sm:$0xff] %v2749_v49  ;;  %v2777_v48 = vpop.permute.xlu0 %383 }
 0x142   :  { %v2751_v52 = vpop.f32.mrf.mxu0  ;;  %v2753_v53 = vpop.f32.mrf.mxu1 }
 0x143   :  { %3021 = vst [vmem:[#allocation20_spill] sm:$0xff] %v2751_v52  ;;  %3022 = vst [vmem:[#allocation21_spill] sm:$0xff] %v2753_v53 }
 0x144   :  { %v805_v1 = vpop.f32.mrf.mxu0  ;;  %v2757_v2 = vpop.f32.mrf.mxu1 }
 0x145   :  { %3023 = vst [vmem:[#allocation22_spill] sm:$0xff] %v2757_v2  ;;  %v2787_v44 = vpop.permute.xlu0 %378 }
 0x146   :  { %v2759_v5 = vpop.f32.mrf.mxu0  ;;  %v2761_v6 = vpop.f32.mrf.mxu1 }
 0x147   :  { %3024 = vst [vmem:[#allocation23_spill] sm:$0xff] %v2759_v5  ;;  %3025 = vst [vmem:[#allocation24_spill] sm:$0xff] %v2761_v6 }
 0x148   :  { %v810_v7 = vpop.f32.mrf.mxu0  ;;  %v2763_v11 = vpop.f32.mrf.mxu1 }
 0x149   :  { %3026 = vst [vmem:[#allocation25_spill] sm:$0xff] %v2763_v11 }
 0x14a   :  { %v2767_v15 = vpop.f32.mrf.mxu0  ;;  %v2769_v16 = vpop.f32.mrf.mxu1 }
 0x14b   :  { %3027 = vst [vmem:[#allocation26_spill] sm:$0xff] %v2767_v15 }
 0x14c   :  { %v815_v58 = vpop.f32.mrf.mxu0  ;;  %v2771_v59 = vpop.f32.mrf.mxu1 }
 0x14d   :  { %3028 = vst [vmem:[#allocation27_spill] sm:$0xff] %v2771_v59 }
 0x14e   :  { %v2773_v30 = vpop.f32.mrf.mxu0  ;;  %v2775_v36 = vpop.f32.mrf.mxu1 }
 0x14f   :  { %3029 = vst [vmem:[#allocation28_spill] sm:$0xff] %v2773_v30 }
 0x150   :  { %v820_v1 = vpop.f32.mrf.mxu0  ;;  %v2779_v0 = vpop.f32.mrf.mxu1 }
 0x151   :  { %v2793_v1 = vpop.permute.xlu0 %373 }
 0x152   :  { %v2781_v7 = vpop.f32.mrf.mxu0  ;;  %v2783_v23 = vpop.f32.mrf.mxu1 }
 0x153   :  { %3030 = vst [vmem:[#allocation29_spill] sm:$0xff] %v2781_v7 }
 0x154   :  { %v825_v27 = vpop.f32.mrf.mxu0  ;;  %v2785_v62 = vpop.f32.mrf.mxu1 }
 0x155   :  { %v2797_v27 = vpop.permute.xlu0 %368 }
 0x156   :  { %v2789_v58 = vpop.f32.mrf.mxu0  ;;  %v1690_v4 = vpop.f32.mrf.mxu1 }
 0x158   :  { %v830_v9 = vpop.f32.mrf.mxu0  ;;  %v1178_v43 = vpop.f32.mrf.mxu1 }
 0x159   :  { %v2805_v3 = vpop.permute.xlu0 %363 }
 0x15a   :  { %v2791_v37 = vpop.f32.mrf.mxu0  ;;  %v1693_v13 = vpop.f32.mrf.mxu1 }
 0x15c   :  { %v835_v56 = vpop.f32.mrf.mxu0  ;;  %v1188_v49 = vpop.f32.mrf.mxu1 }
 0x15d   :  { %v2809_v11 = vpop.permute.xlu0 %358 }
 0x15e   :  { %v2795_v18 = vpop.f32.mrf.mxu0  ;;  %v2801_v10 = vpop.f32.mrf.mxu1  ;;  %3034 = vst [vmem:[#allocation33_spill] sm:$0xff] %v2809_v11  ;;  %v799_v11 = vadd.f32 %v2745_v41, %v2721_v21 }
 0x15f   :  { %3031 = vst [vmem:[#allocation30_spill] sm:$0xff] %v2801_v10 }
 0x160   :  { %v840_v51 = vpop.f32.mrf.mxu0  ;;  %v2803_v9 = vpop.f32.mrf.mxu1  ;;  %v1114_v21 = vadd.f32 %v2739_v35, %v799_v11 }
 0x161   :  { %3032 = vst [vmem:[#allocation31_spill] sm:$0xff] %v2803_v9 }
 0x162   :  { %v2799_v46 = vpop.f32.mrf.mxu0  ;;  %v2807_v63 = vpop.f32.mrf.mxu1  ;;  %v1302_v35 = vmax.f32 %v1114_v21, 0.0 }
 0x163   :  { %3033 = vst [vmem:[#allocation32_spill] sm:$0xff] %v2807_v63 }
 0x164   :  { %v845_v2 = vpop.f32.mrf.mxu0  ;;  %v2811_v15 = vpop.f32.mrf.mxu1 }
 0x165   :  { %3035 = vst [vmem:[#allocation34_spill] sm:$0xff] %v2811_v15  ;;  %v2815_v2 = vpop.permute.xlu0 %353 }
 0x166   :  { %v848_v52 = vpop.f32.mrf.mxu0  ;;  %v2813_v30 = vpop.f32.mrf.mxu1  ;;  %3037 = vst [vmem:[#allocation36_spill] sm:$0xff] %v2815_v2 }
 0x167   :  { %3036 = vst [vmem:[#allocation35_spill] sm:$0xff] %v2813_v30  ;;  %v794_v30 = vadd.f32 %v2737_v33, %v2599_v34 }
 0x168   :  { %v850_v53 = vpop.f32.mrf.mxu0  ;;  %v2817_v59 = vpop.f32.mrf.mxu1 }
 0x169   :  { %3038 = vst [vmem:[#allocation37_spill] sm:$0xff] %v2817_v59  ;;  %v2819_v7 = vpop.permute.xlu0 %348  ;;  %v1109_v34 = vadd.f32 %v2741_v38, %v794_v30 }
 0x16a   :  { %v853_v5 = vpop.f32.mrf.mxu0  ;;  %3039 = vst [vmem:[#allocation38_spill] sm:$0xff] %v2819_v7 }
 0x16c   :  { %v855_v56 = vpop.f32.mrf.mxu0 }
 0x16d   :  { %v2821_v56 = vpop.f32.mrf.mxu1  ;;  %v2832_v7 = vpop.permute.xlu0 %343 }
 0x16e   :  { %v858_v51 = vpop.f32.mrf.mxu0  ;;  %3040 = vst [vmem:[#allocation39_spill] sm:$0xff] %v2821_v56  ;;  %v789_v56 = vadd.f32 %v2729_v26, %v2613_v39  ;;  %v784_v39 = vadd.f32 %v2723_v22, %v2621_v42  ;;  %v849_v42 = vadd.f32 %v848_v52, %v2777_v48 }
 0x170   :  { %v860_v14 = vpop.f32.mrf.mxu0  ;;  %v1104_v26 = vadd.f32 %v2731_v28, %v789_v56 }
 0x171   :  { %v2848_v38 = vpop.permute.xlu0 %338 }
 0x172   :  { %v863_v6 = vpop.f32.mrf.mxu0 }
 0x174   :  { %v865_v10 = vpop.f32.mrf.mxu0 }
 0x175   :  { %v2828_v10 = vpop.f32.mrf.mxu1 }
 0x176   :  { %v868_v9 = vpop.f32.mrf.mxu0 }
 0x177   :  { %v869_v59 = vadd.f32 %v868_v9, %v2733_v29  ;;  %v859_v29 = vadd.f32 %v858_v51, %v2755_v54  ;;  %v2842_v9 = vpop.f32.mrf.mxu1  ;;  %v779_v54 = vadd.f32 %v2715_v17, %v2635_v47  ;;  %v1300_v47 = vmax.f32 %v1104_v26, 0.0  ;;  %v3046_v26 = vld [vmem:[#allocation24_spill] sm:$0xff] }
 0x178   :  { %v870_v53 = vpop.f32.mrf.mxu0 }
 0x179   :  { %v1174_v22 = vadd.f32 %v2783_v23, %v859_v29  ;;  %v2857_v28 = vpop.f32.mrf.mxu1  ;;  %v769_v23 = vadd.f32 %v2699_v61, %v2657_v55  ;;  %v764_v55 = vadd.f32 %v2691_v45, %v2662_v57  ;;  %v829_v57 = vadd.f32 %v2789_v58, %v2805_v3  ;;  %v3045_v58 = vld [vmem:[#allocation28_spill] sm:$0xff] }
 0x17a   :  { %v873_v63 = vpop.f32.mrf.mxu0 }
 0x17b   :  { %v874_v14 = vadd.f32 %v873_v63, %v2591_v31  ;;  %v864_v31 = vadd.f32 %v863_v6, %v2743_v40  ;;  %v854_v40 = vadd.f32 %v853_v5, %v2765_v60  ;;  %v1301_v6 = vmax.f32 %v1109_v34, 0.0 }
 0x17c   :  { %v875_v15 = vpop.f32.mrf.mxu0  ;;  %v774_v5 = vadd.f32 %v2706_v8, %v2643_v50  ;;  %v1094_v60 = vadd.f32 %v2725_v24, %v779_v54  ;;  %v839_v50 = vadd.f32 %v2795_v18, %v2793_v1  ;;  %v1164_v8 = vadd.f32 %v2775_v36, %v849_v42  ;;  %v2883_v1 = vpop.permute.xlu1 %488  ;;  %v3049_v42 = vld [vmem:[#allocation26_spill] sm:$0xff] }
 0x17d   :  { %v1189_v63 = vadd.f32 %v1188_v49, %v874_v14  ;;  %v1169_v30 = vadd.f32 %v2785_v62, %v854_v40  ;;  %v1314_v24 = vmax.f32 %v1174_v22, 0.0  ;;  %v2875_v62 = vpop.permute.xlu0 %493  ;;  %v1084_v61 = vadd.f32 %v2717_v19, %v769_v23  ;;  %v3053_v23 = vld [vmem:[#allocation21_spill] sm:$0xff] }
 0x17e   :  { %v878_v2 = vpop.f32.mrf.mxu0  ;;  %v1089_v48 = vadd.f32 %v2727_v25, %v774_v5  ;;  %v1298_v25 = vmax.f32 %v1094_v60, 0.0  ;;  %v834_v14 = vadd.f32 %v2791_v37, %v2797_v27  ;;  %v1154_v45 = vadd.f32 %v2769_v16, %v839_v50  ;;  %v3041_v27 = vld [vmem:[#allocation33_spill] sm:$0xff]  ;;  %v3044_v16 = vld [vmem:[#allocation36_spill] sm:$0xff] }
 0x17f   :  { %v879_v53 = vadd.f32 %v878_v2, %v2708_v12  ;;  %v1184_v12 = vadd.f32 %v1690_v4, %v869_v59  ;;  %v1317_v49 = vmax.f32 %v1189_v63, 0.0  ;;  %v1099_v4 = vadd.f32 %v2735_v32, %v784_v39  ;;  %v3042_v63 = vld [vmem:[#allocation29_spill] sm:$0xff] }
 0x180   :  { %v880_v41 = vpop.f32.mrf.mxu0  ;;  %v844_v32 = vadd.f32 %v2799_v46, %v2787_v44  ;;  %v2873_v44 = vpop.f32.mrf.mxu1  ;;  %v1313_v36 = vmax.f32 %v1169_v30, 0.0  ;;  %v1297_v21 = vmax.f32 %v1089_v48, 0.0  ;;  %v1312_v19 = vmax.f32 %v1164_v8, 0.0  ;;  %v3052_v30 = vld [vmem:[#allocation23_spill] sm:$0xff]  ;;  %v3054_v8 = vld [vmem:[#allocation14_spill] sm:$0xff] }
 0x181   :  { %v1194_v15 = vadd.f32 %v1693_v13, %v879_v53  ;;  %v1179_v13 = vadd.f32 %v1178_v43, %v864_v31  ;;  %v1316_v43 = vmax.f32 %v1184_v12, 0.0  ;;  %v1299_v51 = vmax.f32 %v1099_v4, 0.0  ;;  %v2896_v12 = vpop.permute.xlu0 %483 }
 0x182   :  { %v2839_v33 = vpop.f32.mrf.mxu0  ;;  %v1159_v18 = vadd.f32 %v2779_v0, %v844_v32  ;;  %v1079_v53 = vadd.f32 %v2719_v20, %v764_v55  ;;  %v2891_v31 = vpop.f32.mrf.mxu1  ;;  %v1296_v0 = vmax.f32 %v1084_v61, 0.0  ;;  %v3043_v20 = vld [vmem:[#allocation27_spill] sm:$0xff]  ;;  %v819_v39 = vadd.f32 %v3045_v58, %v3044_v16  ;;  %v3062_v16 = vld [vmem:[#allocation13_spill] sm:$0xff] }
 0x183   :  { %v1318_v2 = vmax.f32 %v1194_v15, 0.0  ;;  %v1315_v52 = vmax.f32 %v1179_v13, 0.0  ;;  %v824_v15 = vadd.f32 %v3042_v63, %v3041_v27  ;;  %v1149_v34 = vadd.f32 %v3043_v20, %v834_v14  ;;  %v2905_v13 = vpop.permute.xlu1 %478  ;;  %v3056_v14 = vld [vmem:[#allocation22_spill] sm:$0xff]  ;;  %v3059_v27 = vld [vmem:[#allocation12_spill] sm:$0xff] }
 0x184   :  { %v885_v11 = vpop.f32.mrf.mxu0  ;;  %v1311_v29 = vmax.f32 %v1159_v18, 0.0  ;;  %v2903_v40 = vpop.f32.mrf.mxu1  ;;  %v1134_v48 = vadd.f32 %v3053_v23, %v819_v39  ;;  %v1290_v63 = vmax.f32 %v3059_v27, 0.0  ;;  %v1289_v58 = vmax.f32 %v3062_v16, 0.0 }
 0x185   :  { %1603 = vmatprep.subr.mxu1 %v1318_v2  ;;  %v1295_v2 = vmax.f32 %v1079_v53, 0.0  ;;  %v1310_v11 = vmax.f32 %v1154_v45, 0.0  ;;  %v1309_v60 = vmax.f32 %v1149_v34, 0.0  ;;  %v474_v55 = vpop.permute.xlu0 %473  ;;  %v3058_v45 = vld [vmem:[#allocation18_spill] sm:$0xff] }
 0x186   :  { %v2853_v59 = vpop.f32.mrf.mxu0  ;;  %1604 = vmatpush3.msra.mxu1 %v1302_v35  ;;  %v1144_v35 = vadd.f32 %v3046_v26, %v829_v57  ;;  %v1258_v50 = vpop.f32.mrf.mxu1 }
 0x187   :  { %1605 = vmatprep.subr.mxu1 %v1317_v49  ;;  %v3047_v49 = vld [vmem:[#allocation16_spill] sm:$0xff]  ;;  %v2921_v53 = vpop.permute.xlu1 %468 }
 0x188   :  { %v890_v17 = vpop.f32.mrf.mxu0  ;;  %1606 = vmatpush3.msra.mxu1 %v1301_v6  ;;  %v1294_v54 = vmax.f32 %v3047_v49, 0.0  ;;  %v3048_v6 = vld [vmem:[#allocation38_spill] sm:$0xff]  ;;  %v2935_v49 = vld [vmem:[%s2998_s3 + $0x8] sm:$0x77] }
 0x189   :  { %1607 = vmatprep.subr.mxu1 %v1316_v43  ;;  %v814_v22 = vadd.f32 %v3049_v42, %v3048_v6  ;;  %v3050_v43 = vld [vmem:[#allocation25_spill] sm:$0xff]  ;;  %v464_v39 = vpop.permute.xlu0 %463 }
 0x18a   :  { %v2868_v56 = vpop.f32.mrf.mxu0  ;;  %1608 = vmatpush3.msra.mxu1 %v1300_v47  ;;  %v1139_v5 = vadd.f32 %v3050_v43, %v824_v15  ;;  %v3051_v47 = vld [vmem:[#allocation17_spill] sm:$0xff] }
 0x18b   :  { %1609 = vmatprep.subr.mxu1 %v1315_v52  ;;  %v1293_v17 = vmax.f32 %v3051_v47, 0.0  ;;  %v809_v52 = vadd.f32 %v3052_v30, %v2832_v7  ;;  %v1129_v18 = vadd.f32 %v3056_v14, %v814_v22  ;;  %v3057_v7 = vld [vmem:[#allocation15_spill] sm:$0xff]  ;;  %v3064_v6 = vld [vmem:[#allocation9_spill] sm:$0xff]  ;;  %v459_v22 = vpop.permute.xlu1 %458  ;;  %v3070_v14 = vld [vmem:[#allocation2_spill] sm:$0xff] }
 0x18c   :  { %v895_v46 = vpop.f32.mrf.mxu0  ;;  %1610 = vmatpush3.msra.mxu1 %v1299_v51  ;;  %v1308_v51 = vmax.f32 %v1144_v35, 0.0  ;;  %v1288_v42 = vmax.f32 %v3064_v6, 0.0 }
 0x18d   :  { %1611 = vmatprep.subr.mxu1 %v1314_v24  ;;  %v1292_v24 = vmax.f32 %v3054_v8, 0.0  ;;  %v1305_v34 = vmax.f32 %v1129_v18, 0.0  ;;  %v454_v8 = vpop.permute.xlu0 %453  ;;  %v939_v18 = vadd.f32 %v3070_v14, %v474_v55 }
 0x18e   :  { %v2886_v41 = vpop.f32.mrf.mxu0  ;;  %1612 = vmatpush3.msra.mxu1 %v1298_v25  ;;  %v3055_v25 = vld [vmem:[#allocation20_spill] sm:$0xff] }
 0x18f   :  { %1613 = vmatprep.subr.mxu1 %v1313_v36  ;;  %v804_v46 = vadd.f32 %v3055_v25, %v2848_v38  ;;  %v1307_v36 = vmax.f32 %v1139_v5, 0.0  ;;  %v3060_v38 = vld [vmem:[#allocation19_spill] sm:$0xff] }
 0x190   :  { %v900_v37 = vpop.f32.mrf.mxu0  ;;  %1614 = vmatpush3.msra.mxu1 %v1297_v21  ;;  %v1291_v21 = vmax.f32 %v3057_v7, 0.0 }
 0x191   :  { %1615 = vmatprep.subr.mxu1 %v1312_v19  ;;  %v1124_v19 = vadd.f32 %v3058_v45, %v809_v52  ;;  %v1717_v37 = vpop.f32.mrf.mxu1  ;;  %v1119_v20 = vadd.f32 %v3060_v38, %v804_v46  ;;  %v3068_v46 = vld [vmem:[#allocation11_spill] sm:$0xff] }
 0x192   :  { %v2898_v3 = vpop.f32.mrf.mxu0  ;;  %1616 = vmatpush3.msra.mxu1 %v1296_v0  ;;  %v1306_v0 = vmax.f32 %v1134_v48, 0.0  ;;  %v1348_v48 = vcombine.high %v2935_v49, %v2935_v49 }
 0x193   :  { %1617 = vmatprep.subr.mxu1 %v1311_v29  ;;  %v3061_v29 = vld [vmem:[#allocation6_spill] sm:$0xff]  ;;  %v1304_v35 = vmax.f32 %v1124_v19, 0.0  ;;  %v1303_v5 = vmax.f32 %v1119_v20, 0.0 }
 0x194   :  { %v905_v4 = vpop.f32.mrf.mxu0  ;;  %1618 = vmatpush3.msra.mxu1 %v1295_v2  ;;  %v959_v2 = vadd.f32 %v3061_v29, %v2875_v62 }
 0x195   :  { %1619 = vmatprep.subr.mxu1 %v1310_v11  ;;  %v1268_v11 = vpop.f32.mrf.mxu1 }
 0x196   :  { %v2912_v32 = vpop.f32.mrf.mxu0  ;;  %1620 = vmatpush3.msra.mxu1 %v1294_v54  ;;  %v3063_v54 = vld [vmem:[#allocation5_spill] sm:$0xff]  ;;  %v1274_v62 = vadd.f32 %v1717_v37, %v959_v2  ;;  %v444_v37 = vpop.permute.xlu0 %443 }
 0x197   :  { %1621 = vmatprep.subr.mxu1 %v1309_v60  ;;  %v954_v4 = vadd.f32 %v3063_v54, %v2883_v1  ;;  %v3065_v60 = vld [vmem:[#allocation10_spill] sm:$0xff]  ;;  %v3067_v1 = vld [vmem:[#allocation3_spill] sm:$0xff] }
 0x198   :  { %v910_v61 = vpop.f32.mrf.mxu0  ;;  %1622 = vmatpush3.msra.mxu1 %v1293_v17  ;;  %v1287_v47 = vmax.f32 %v3065_v60, 0.0  ;;  %v3066_v17 = vld [vmem:[#allocation4_spill] sm:$0xff] }
 0x199   :  { %1623 = vmatprep.subr.mxu1 %v1308_v51  ;;  %v949_v30 = vadd.f32 %v3066_v17, %v2896_v12  ;;  %v1269_v52 = vadd.f32 %v1268_v11, %v954_v4  ;;  %v944_v51 = vadd.f32 %v3067_v1, %v2905_v13  ;;  %v1334_v61 = vmax.f32 %v1274_v62, 0.0  ;;  %v3072_v4 = vld [vmem:[#allocation35_spill] sm:$0xff]  ;;  %v3073_v62 = vld [vmem:[#allocation37_spill] sm:$0xff]  ;;  %v3074_v60 = vld [vmem:[#allocation32_spill] sm:$0xff] }
 0x19a   :  { %v2924_v57 = vpop.f32.mrf.mxu0  ;;  %1624 = vmatpush3.msra.mxu1 %v1292_v24  ;;  %v3069_v12 = vmov 0.0   ;;  %v1254_v13 = vadd.f32 %v2873_v44, %v939_v18  ;;  %v3076_v1 = vld [vmem:[#allocation30_spill] sm:$0xff]  ;;  %v3079_v18 = vld [vmem:[#allocation7_spill] sm:$0xff] }
 0x19b   :  { %1625 = vmatprep.subr.mxu1 %v1307_v36  ;;  %v1264_v24 = vadd.f32 %v2903_v40, %v949_v30  ;;  %v449_v36 = vpop.permute.xlu1 %448  ;;  %v1259_v7 = vadd.f32 %v1258_v50, %v944_v51  ;;  %v3075_v30 = vld [vmem:[#allocation34_spill] sm:$0xff] }
 0x19c   :  { %v915_v15 = vpop.f32.mrf.mxu0  ;;  %1626 = vmatpush3.msra.mxu1 %v1291_v21  ;;  %v1333_v21 = vmax.f32 %v1269_v52, 0.0  ;;  %v1330_v38 = vmax.f32 %v1254_v13, 0.0  ;;  %v914_v2 = vadd.f32 %v2924_v57, %v449_v36 }
 0x19d   :  { %1627 = vmatprep.subr.mxu1 %v1306_v0  ;;  %v1332_v40 = vmax.f32 %v1264_v24, 0.0  ;;  %v1331_v27 = vmax.f32 %v1259_v7, 0.0  ;;  %v3077_v24 = vld [vmem:[#allocation8_spill] sm:$0xff] }
 0x19e   :  { %v918_v26 = vpop.f32.mrf.mxu0  ;;  %1628 = vmatpush3.msra.mxu1 %v1290_v63  ;;  %v1229_v54 = vadd.f32 %v2828_v10, %v914_v2 }
 0x19f   :  { %1629 = vmatprep.subr.mxu1 %v1305_v34  ;;  %v439_v15 = vpop.permute.xlu1 %438  ;;  %v919_v44 = vadd.f32 %v918_v26, %v454_v8 }
 0x1a0   :  { %v920_v43 = vpop.f32.mrf.mxu0  ;;  %1630 = vmatpush3.msra.mxu1 %v1289_v58 }
 0x1a1   :  { %1631 = vmatprep.subr.mxu1 %v1304_v35  ;;  %v3071_v35 = vld [vmem:[#allocation39_spill] sm:$0xff] }
 0x1a2   :  { %v923_v23 = vpop.f32.mrf.mxu0  ;;  %1632 = vmatpush3.msra.mxu1 %v1288_v42  ;;  %v1234_v11 = vadd.f32 %v3071_v35, %v919_v44 }
 0x1a3   :  { %1633 = vmatprep.subr.mxu1 %v1303_v5  ;;  %v924_v55 = vadd.f32 %v923_v23, %v459_v22 }
 0x1a4   :  { %v925_v25 = vpop.f32.mrf.mxu0  ;;  %1634 = vmatpush3.msra.mxu1 %v1287_v47 }
 0x1a5   :  { %1418 = vmatmul.mubr.f32.vlgmr.msra.gmra.mxu1 %v3068_v46  ;;  %1423 = vmatprep.subr.mxu1 %v3069_v12  ;;  %v1239_v16 = vadd.f32 %v2857_v28, %v924_v55  ;;  %v3078_v25 = vld [vmem:[#allocation31_spill] sm:$0xff] }
 0x1a6   :  { %v928_v45 = vpop.f32.mrf.mxu0  ;;  %1424 = vmatpush1.msra.mxu1 %v1334_v61  ;;  %1548 = vmatprep.mubr.msk.f32.mxu1 %vm1350_vm1, %v1348_v48  ;;  %v1720_v48 = vpop.f32.mrf.mxu1 }
 0x1a7   :  { %1425 = vmatprep.subr.mxu1 %v3069_v12  ;;  %v929_v0 = vadd.f32 %v928_v45, %v464_v39  ;;  %v909_v39 = vadd.f32 %v2912_v32, %v444_v37  ;;  %v1327_v57 = vmax.f32 %v1239_v16, 0.0  ;;  %v1326_v32 = vmax.f32 %v1234_v11, 0.0 }
 0x1a8   :  { %v930_v19 = vpop.f32.mrf.mxu0  ;;  %1426 = vmatpush1.msra.mxu1 %v1333_v21  ;;  %v1278_v14 = vpop.f32.mrf.mxu1 }
 0x1a9   :  { %1427 = vmatprep.subr.mxu1 %v3069_v12  ;;  %v1244_v34 = vadd.f32 %v2842_v9, %v929_v0  ;;  %v429_v9 = vpop.permute.xlu1 %428  ;;  %v1224_v6 = vadd.f32 %v3072_v4, %v909_v39 }
 0x1aa   :  { %v933_v63 = vpop.f32.mrf.mxu0  ;;  %1428 = vmatpush1.msra.mxu1 %v1332_v40  ;;  %v894_v22 = vadd.f32 %v2868_v56, %v429_v9 }
 0x1ab   :  { %v934_v50 = vadd.f32 %v933_v63, %v2921_v53  ;;  %1429 = vmatprep.subr.mxu1 %v3069_v12  ;;  %v434_v53 = vpop.permute.xlu0 %433  ;;  %v1328_v26 = vmax.f32 %v1244_v34, 0.0  ;;  %v1324_v47 = vmax.f32 %v1224_v6, 0.0 }
 0x1ac   :  { %1430 = vmatpush1.msra.mxu1 %v1331_v27  ;;  %v935_v20 = vpop.f32.mrf.mxu0  ;;  %v899_v28 = vadd.f32 %v2886_v41, %v434_v53  ;;  %v1209_v52 = vadd.f32 %v3075_v30, %v894_v22 }
 0x1ad   :  { %v1249_v29 = vadd.f32 %v2891_v31, %v934_v50  ;;  %1431 = vmatprep.subr.mxu1 %v3069_v12  ;;  %v904_v31 = vadd.f32 %v2898_v3, %v439_v15  ;;  %v1325_v3 = vmax.f32 %v1229_v54, 0.0  ;;  %v419_v10 = vpop.permute.xlu1 %418 }
 0x1ae   :  { %1432 = vmatpush1.msra.mxu1 %v1330_v38  ;;  %v1214_v41 = vadd.f32 %v3074_v60, %v899_v28  ;;  %v884_v17 = vadd.f32 %v2839_v33, %v419_v10  ;;  %v1321_v33 = vmax.f32 %v1209_v52, 0.0 }
 0x1af   :  { %v1329_v58 = vmax.f32 %v1249_v29, 0.0  ;;  %1433 = vmatprep.subr.mxu1 %v3069_v12  ;;  %v424_v42 = vpop.permute.xlu0 %423  ;;  %v1219_v43 = vadd.f32 %v3073_v62, %v904_v31 }
 0x1b0   :  { %v889_v5 = vadd.f32 %v2853_v59, %v424_v42  ;;  %v1322_v8 = vmax.f32 %v1214_v41, 0.0  ;;  %v1199_v46 = vadd.f32 %v3078_v25, %v884_v17 }
 0x1b1   :  { %1434 = vmatpush1.msra.mxu1 %v1329_v58  ;;  %v1323_v56 = vmax.f32 %v1219_v43, 0.0  ;;  %v499_v59 = vpop.permute.xlu1 %498 }
 0x1b2   :  { %1435 = vmatprep.subr.mxu1 %v3069_v12  ;;  %v1204_v51 = vadd.f32 %v3076_v1, %v889_v5  ;;  %v964_v36 = vadd.f32 %v3079_v18, %v499_v59  ;;  %v1319_v13 = vmax.f32 %v1199_v46, 0.0 }
 0x1b3   :  { %1436 = vmatpush1.msra.mxu1 %v1328_v26  ;;  %v504_v23 = vpop.permute.xlu0 %503 }
 0x1b4   :  { %1437 = vmatprep.subr.mxu1 %v3069_v12  ;;  %v969_v61 = vadd.f32 %v3077_v24, %v504_v23  ;;  %v1320_v21 = vmax.f32 %v1204_v51, 0.0  ;;  %v1279_v45 = vadd.f32 %v1278_v14, %v964_v36 }
 0x1b5   :  { %1438 = vmatpush1.msra.mxu1 %v1327_v57 }
 0x1b6   :  { %1439 = vmatprep.subr.mxu1 %v3069_v12  ;;  %v1284_v7 = vadd.f32 %v1720_v48, %v969_v61  ;;  %v1335_v19 = vmax.f32 %v1279_v45, 0.0 }
 0x1b7   :  { %1440 = vmatpush1.msra.mxu1 %v1326_v32  ;;  %v1343_v63 = vpop.permute.xlu0 %1342 }
 0x1b8   :  { %1441 = vmatprep.subr.mxu1 %v3069_v12  ;;  %v1336_v40 = vmax.f32 %v1284_v7, 0.0 }
 0x1b9   :  { %1442 = vmatpush1.msra.mxu1 %v1325_v3 }
 0x1ba   :  { %1443 = vmatprep.subr.mxu1 %v3069_v12 }
 0x1bb   :  { %1444 = vmatpush1.msra.mxu1 %v1324_v47 }
 0x1bc   :  { %1445 = vmatprep.subr.mxu1 %v3069_v12 }
 0x1bd   :  { %1446 = vmatpush1.msra.mxu1 %v1323_v56 }
 0x1be   :  { %1447 = vmatprep.subr.mxu1 %v3069_v12 }
 0x1bf   :  { %1448 = vmatpush1.msra.mxu1 %v1322_v8 }
 0x1c0   :  { %1449 = vmatprep.subr.mxu1 %v3069_v12 }
 0x1c1   :  { %1450 = vmatpush1.msra.mxu1 %v1321_v33 }
 0x1c2   :  { %1451 = vmatprep.subr.mxu1 %v3069_v12 }
 0x1c3   :  { %1452 = vmatpush1.msra.mxu1 %v1320_v21 }
 0x1c4   :  { %1453 = vmatprep.subr.mxu1 %v3069_v12 }
 0x1c5   :  { %1454 = vmatpush1.msra.mxu1 %v1319_v13 }
 0x1c6   :  { %1483 = vmatprep.subr.mxu1 %v3069_v12 }
 0x1c7   :  { %1484 = vmatpush2.msra.mxu1 %v1336_v40 }
 0x1c8   :  { %1485 = vmatprep.subr.mxu1 %v3069_v12 }
 0x1c9   :  { %1486 = vmatpush2.msra.mxu1 %v1335_v19 }
 0x1ca   :  { %1488 = vmatmul.mubr.f32.vlgmr.msra.gmra.mxu1 %v2935_v49 }
 0x265   :  { %v1635_v0 = vpop.f32.mrf.mxu1 }
 0x267   :  { %v1636_v37 = vpop.f32.mrf.mxu1 }
 0x268   :  { %v1637_v27 = vadd.f32 %v1636_v37, %v1635_v0 }
 0x26a   :  { %v1420_v55 = vadd.f32 %v1637_v27, %v1343_v63 }
 0x28a   :  { %v1489_v50 = vpop.f32.mrf.mxu1 }
 0x28b   :  { %v1490_v15 = vadd.f32 %v1489_v50, %v1420_v55 }
 0x28c   :  { %v1491_v38 = vpop.f32.mrf.mxu1 }
 0x28d   :  { %1493 = vst [vmem:[%s2999_s5] sm:$0x7] %v1490_v15 }

</bundles_post_ra>
